<compile_context>
chip_gen: v5e
topology: v5e:2x2
jax: 0.10.0
libtpu: 0.0.40
codegen_flags: <defaults>
</compile_context>

<pallas_src>
import functools

import jax
import jax.numpy as jnp
from jax import lax
from jax.experimental import pallas as pl
from jax.experimental.pallas import tpu as pltpu


def _layernorm(v, w, b, eps=1e-5):
    v32 = v.astype(jnp.float32)
    mu = jnp.mean(v32, axis=-1, keepdims=True)
    var = jnp.mean((v32 - mu) ** 2, axis=-1, keepdims=True)
    return (v32 - mu) * jax.lax.rsqrt(var + eps) * w + b


def _erf(v):
    # Abramowitz & Stegun 7.1.26 (|err| <= 1.5e-7): exact-GELU semantics using
    # only exp/mul/add (guaranteed Mosaic lowerings).
    a1, a2, a3, a4, a5 = 0.254829592, -0.284496736, 1.421413741, -1.453152027, 1.061405429
    p = 0.3275911
    av = jnp.abs(v)
    t = 1.0 / (1.0 + p * av)
    poly = ((((a5 * t + a4) * t + a3) * t + a2) * t + a1) * t
    y = 1.0 - poly * jnp.exp(-av * av)
    return jnp.where(v >= 0, y, -y)


def _gelu_exact(v):
    # nn.GELU() default = exact erf formulation
    return 0.5 * v * (1.0 + _erf(v * 0.7071067811865476))


def _block_kernel(x_ref,
                  ln1w_ref, ln1b_ref,
                  wq_ref, bq_ref, wk_ref, wv_ref, bv_ref,
                  wo_ref, bo_ref,
                  ln2w_ref, ln2b_ref,
                  w1_ref, b1_ref, w2_ref, b2_ref,
                  o_ref,
                  k_s, v_s, q_s, ln2_s, acc_s,
                  *, n_head, d_head, q_tile, kv_chunk):
    T = x_ref.shape[1]
    scale = float(d_head) ** (-0.25)
    qi = pl.program_id(1)
    hi = pl.program_id(2)

    # ------ once per batch element: attn_ln + K/V projections (chunked over T,
    # head-major weights -> direct head-major scratch stores) ------
    @pl.when(jnp.logical_and(qi == 0, hi == 0))
    def _kv_prologue():
        for c in range(T // kv_chunk):                     # few static chunks
            r0 = c * kv_chunk
            xc = x_ref[0, r0:r0 + kv_chunk, :].astype(jnp.float32)
            lnc = _layernorm(xc, ln1w_ref[0], ln1b_ref[0]).astype(jnp.bfloat16)

            def kv_head(h, carry):
                k_s[h, r0:r0 + kv_chunk, :] = jnp.dot(
                    lnc, wk_ref[h], preferred_element_type=jnp.float32) * scale
                v_s[h, r0:r0 + kv_chunk, :] = jnp.dot(
                    lnc, wv_ref[h], preferred_element_type=jnp.float32) + bv_ref[h]
                return carry

            lax.fori_loop(0, n_head, kv_head, 0, unroll=False)

    # ------ once per query-row tile (hidden chunk 0): attention + residual ------
    @pl.when(hi == 0)
    def _attention():
        row0 = pl.multiple_of(qi * q_tile, q_tile)
        x_t = x_ref[0, pl.ds(row0, q_tile), :].astype(jnp.float32)       # (TQ, N)
        ln_t = _layernorm(x_t, ln1w_ref[0], ln1b_ref[0]).astype(jnp.bfloat16)

        def q_head(h, carry):                                            # Q per tile
            q_s[h] = (jnp.dot(ln_t, wq_ref[h],
                              preferred_element_type=jnp.float32)
                      + bq_ref[h]) * scale
            return carry
        lax.fori_loop(0, n_head, q_head, 0, unroll=False)

        qh = q_s[...].astype(jnp.bfloat16)                               # (H, TQ, d)
        s = jnp.einsum('hqd,hkd->hqk', qh, k_s[...].astype(jnp.bfloat16),
                       preferred_element_type=jnp.float32)               # (H, TQ, T)
        s = s - jnp.max(s, axis=-1, keepdims=True)
        e = jnp.exp(s)
        p = (e * pl.reciprocal(jnp.sum(e, axis=-1, keepdims=True), approx=True)
             ).astype(jnp.bfloat16)
        o_h = jnp.einsum('hqk,hkd->hqd', p, v_s[...].astype(jnp.bfloat16),
                         preferred_element_type=jnp.float32)             # (H, TQ, d)
        q_s[...] = o_h                                                   # reuse scratch

        # head recombination fused into the output projection
        acc_s[...] = x_t + bo_ref[0]

        def out_head(h, carry):
            acc_s[...] += jnp.dot(q_s[h].astype(jnp.bfloat16), wo_ref[h],
                                  preferred_element_type=jnp.float32)
            return carry
        lax.fori_loop(0, n_head, out_head, 0, unroll=False)

        ln2_s[...] = _layernorm(acc_s[...], ln2w_ref[0], ln2b_ref[0]
                                ).astype(jnp.bfloat16)

    # ------ every grid step: one streamed hidden-dim chunk of the MLP ------
    h1 = jnp.dot(ln2_s[...], w1_ref[...],
                 preferred_element_type=jnp.float32) + b1_ref[0]         # (TQ, MT)
    g = _gelu_exact(h1).astype(jnp.bfloat16)
    acc_s[...] += jnp.dot(g, w2_ref[...], preferred_element_type=jnp.float32)

    @pl.when(hi == pl.num_programs(2) - 1)
    def _finalize():
        o_ref[0] = (acc_s[...] + b2_ref[0]).astype(o_ref.dtype)


def prepare_params(params, n_head):
    """One-time conversion from the PyTorch layout: head-major QKV/out-proj
    weights, (in,out) MLP weights, bf16 casts for all matmul operands."""
    f32, bf16 = jnp.float32, jnp.bfloat16
    N = params["wq"].shape[0]
    d = N // n_head

    def head_major_in(w):   # torch (out,in) -> (H, in, d): y_h = x @ W_h
        return jnp.asarray(w, f32).reshape(n_head, d, N).transpose(0, 2, 1).astype(bf16)

    def head_major_bias(b):
        return jnp.asarray(b, f32).reshape(n_head, 1, d)

    def row(b):
        return jnp.asarray(b, f32).reshape(1, -1)

    return dict(
        ln1w=row(params["attn_ln_w"]), ln1b=row(params["attn_ln_b"]),
        wq=head_major_in(params["wq"]), bq=head_major_bias(params["bq"]),
        wk=head_major_in(params["wk"]),
        wv=head_major_in(params["wv"]), bv=head_major_bias(params["bv"]),
        wo=jnp.asarray(params["wo"], f32).T.reshape(n_head, d, N).astype(bf16),
        bo=row(params["bo"]),
        ln2w=row(params["mlp_ln_w"]), ln2b=row(params["mlp_ln_b"]),
        w1=jnp.asarray(params["w1"], f32).T.astype(bf16), b1=row(params["b1"]),
        w2=jnp.asarray(params["w2"], f32).T.astype(bf16), b2=row(params["b2"]),
    )


def _vmem_limit_bytes():
    try:
        cap = int(pltpu.get_tpu_info().vmem_capacity_bytes)
    except Exception:
        cap = 128 * 1024 * 1024
    # leave headroom for compiler scratch/spill: ~48 MiB on v7x, ~96 MiB on v5e/v6e
    return max(32 * 1024 * 1024, (cap * 3) // 4)


def residual_attention_block(x, prep, n_head, q_tile=None, kv_chunk=None, mlp_tile=None):
    """x: (B, T, N) float32. prep: output of prepare_params."""
    B, T, N = x.shape
    assert N % n_head == 0
    d_head = N // n_head
    n_mlp = 4 * N

    # q_tile: bound the live (H, q_tile, T) f32 score tensor to ~8 MiB.
    if q_tile is None:
        for cand in (512, 256, 128, 64, 32, 16, 8):
            if T % cand == 0 and n_head * cand * T * 4 <= 8 * 1024 * 1024:
                q_tile = cand
                break
        if q_tile is None:
            q_tile = 8 if T % 8 == 0 else T
    assert T % q_tile == 0 and q_tile % 8 == 0, (T, q_tile)
    nq = T // q_tile

    if kv_chunk is None:
        kv_chunk = T
        for cand in (512, 256, 128, 64, 32, 16, 8):
            if T % cand == 0:
                kv_chunk = cand
                break
    assert T % kv_chunk == 0 and kv_chunk % 8 == 0, (T, kv_chunk)

    if mlp_tile is None:
        mlp_tile = n_mlp
        for cand in (2048, 1024, 512, 256, 128):
            if n_mlp % cand == 0:
                mlp_tile = cand
                break
    assert n_mlp % mlp_tile == 0 and (mlp_tile % 128 == 0 or mlp_tile == n_mlp)
    nh = n_mlp // mlp_tile

    # constant-index weights/biases: single-buffered (no pipelining benefit)
    def const(shape):
        return pl.BlockSpec(shape, lambda b, q, h: (0,) * len(shape),
                            pipeline_mode=pl.Buffered(1))

    if B == 1:
        x_spec = pl.BlockSpec((1, T, N), lambda b, q, h: (b, 0, 0),
                              pipeline_mode=pl.Buffered(1))
    else:
        x_spec = pl.BlockSpec((1, T, N), lambda b, q, h: (b, 0, 0))

    in_specs = [
        x_spec,                                                     # x (full seq, per batch)
        const((1, N)), const((1, N)),                               # attn_ln w, b
        const((n_head, N, d_head)), const((n_head, 1, d_head)),    # wq, bq (head-major)
        const((n_head, N, d_head)),                                 # wk (head-major)
        const((n_head, N, d_head)), const((n_head, 1, d_head)),    # wv, bv (head-major)
        const((n_head, d_head, N)), const((1, N)),                 # wo (head-major), bo
        const((1, N)), const((1, N)),                               # mlp_ln w, b
        pl.BlockSpec((N, mlp_tile), lambda b, q, h: (0, h)),        # w1 (hidden-streamed)
        pl.BlockSpec((1, mlp_tile), lambda b, q, h: (0, h)),        # b1 (hidden-streamed)
        pl.BlockSpec((mlp_tile, N), lambda b, q, h: (h, 0)),        # w2 (hidden-streamed)
        const((1, N)),                                              # b2
    ]
    ins = (x,
           prep["ln1w"], prep["ln1b"],
           prep["wq"], prep["bq"], prep["wk"], prep["wv"], prep["bv"],
           prep["wo"], prep["bo"],
           prep["ln2w"], prep["ln2b"],
           prep["w1"], prep["b1"], prep["w2"], prep["b2"])

    flops = int(B * (24 * T * N * N + 4 * T * T * N))
    transcendentals = int(B * (n_head * T * T + T * n_mlp))
    bytes_acc = int(x.size) * x.dtype.itemsize * 2 + sum(
        int(v.size) * v.dtype.itemsize for v in prep.values())

    kernel = functools.partial(_block_kernel, n_head=n_head, d_head=d_head,
                               q_tile=q_tile, kv_chunk=kv_chunk)
    return pl.pallas_call(
        kernel,
        out_shape=jax.ShapeDtypeStruct((B, T, N), x.dtype),
        grid_spec=pltpu.PrefetchScalarGridSpec(
            num_scalar_prefetch=0,
            grid=(B, nq, nh),
            in_specs=in_specs,
            out_specs=pl.BlockSpec((1, q_tile, N), lambda b, q, h: (b, q, 0)),
            scratch_shapes=[
                pltpu.VMEM((n_head, T, d_head), jnp.float32),       # K (scaled)
                pltpu.VMEM((n_head, T, d_head), jnp.float32),       # V
                pltpu.VMEM((n_head, q_tile, d_head), jnp.float32),  # Q tile / attn-out tile
                pltpu.VMEM((q_tile, N), jnp.bfloat16),              # mlp_ln(x1), reused per chunk
                pltpu.VMEM((q_tile, N), jnp.float32),               # residual + MLP accumulator
            ]),
        compiler_params=pltpu.CompilerParams(
            dimension_semantics=("parallel", "arbitrary", "arbitrary"),
            vmem_limit_bytes=_vmem_limit_bytes()),
        cost_estimate=pl.CostEstimate(flops=flops,
                                      transcendentals=transcendentals,
                                      bytes_accessed=bytes_acc),
    )(*ins)


# ----------------------------- reference (plain JAX, f32) -----------------------------
def _ref_block(x, p, n_head):
    def ln(v, w, b):
        mu = jnp.mean(v, -1, keepdims=True)
        var = jnp.mean((v - mu) ** 2, -1, keepdims=True)
        return (v - mu) / jnp.sqrt(var + 1e-5) * w + b

    B, T, N = x.shape
    d = N // n_head
    scale = d ** (-0.25)

    lnx = ln(x, p["attn_ln_w"], p["attn_ln_b"])
    q = lnx @ p["wq"].T + p["bq"]
    k = lnx @ p["wk"].T
    v = lnx @ p["wv"].T + p["bv"]
    q = q.reshape(B, T, n_head, d).transpose(0, 2, 1, 3) * scale
    k = k.reshape(B, T, n_head, d).transpose(0, 2, 3, 1) * scale
    v = v.reshape(B, T, n_head, d).transpose(0, 2, 1, 3)
    qk = q @ k
    w = jax.nn.softmax(qk, axis=-1)
    wv = (w @ v).transpose(0, 2, 1, 3).reshape(B, T, N)
    x = x + (wv @ p["wo"].T + p["bo"])

    ln2 = ln(x, p["mlp_ln_w"], p["mlp_ln_b"])
    h = ln2 @ p["w1"].T + p["b1"]
    g = 0.5 * h * (1.0 + jax.lax.erf(h / jnp.sqrt(2.0)))
    return x + (g @ p["w2"].T + p["b2"])


if __name__ == "__main__":
    B, T, N, H = 2, 16, 64, 4
    n_mlp = 4 * N

    key = jax.random.PRNGKey(0)
    ks = jax.random.split(key, 16)

    def rnd(k, shape, std=0.1):
        return (std * jax.random.normal(k, shape)).astype(jnp.float32)

    params = {
        "attn_ln_w": 1.0 + rnd(ks[12], (N,)),
        "attn_ln_b": rnd(ks[13], (N,)),
        "wq": rnd(ks[0], (N, N)), "bq": rnd(ks[1], (N,)),
        "wk": rnd(ks[2], (N, N)),
        "wv": rnd(ks[3], (N, N)), "bv": rnd(ks[4], (N,)),
        "wo": rnd(ks[5], (N, N)), "bo": rnd(ks[6], (N,)),
        "mlp_ln_w": 1.0 + rnd(ks[14], (N,)),
        "mlp_ln_b": rnd(ks[15], (N,)),
        "w1": rnd(ks[7], (n_mlp, N)), "b1": rnd(ks[8], (n_mlp,)),
        "w2": rnd(ks[9], (N, n_mlp)), "b2": rnd(ks[10], (N,)),
    }

    x = jax.random.normal(ks[11], (B, T, N), jnp.float32)

    prep = prepare_params(params, H)     # one-time transpose / head-major / bf16 cast
    # small tiles chosen to exercise multi-q-tile, chunked K/V prologue and
    # multi-chunk MLP hidden streaming on the toy shapes
    out = residual_attention_block(x, prep, H, q_tile=8, kv_chunk=8, mlp_tile=128)
    out = jax.block_until_ready(out)

    ref = _ref_block(x, params, H)
    assert out.shape == (B, T, N)
    max_err = float(jnp.max(jnp.abs(out - ref)))
    assert jnp.allclose(out, ref, atol=3e-2, rtol=3e-2), max_err

    print("KERNEL_OK")
</pallas_src>

<mosaic_0001>
module attributes {stable_mosaic.version = 11 : i64} {
  func.func @_block_kernel(%arg0: i32, %arg1: i32, %arg2: i32, %arg3: memref<1x16x64xf32, #tpu.memory_space<vmem>>, %arg4: memref<1x64xf32, #tpu.memory_space<vmem>>, %arg5: memref<1x64xf32, #tpu.memory_space<vmem>>, %arg6: memref<4x64x16xbf16, #tpu.memory_space<vmem>>, %arg7: memref<4x1x16xf32, #tpu.memory_space<vmem>>, %arg8: memref<4x64x16xbf16, #tpu.memory_space<vmem>>, %arg9: memref<4x64x16xbf16, #tpu.memory_space<vmem>>, %arg10: memref<4x1x16xf32, #tpu.memory_space<vmem>>, %arg11: memref<4x16x64xbf16, #tpu.memory_space<vmem>>, %arg12: memref<1x64xf32, #tpu.memory_space<vmem>>, %arg13: memref<1x64xf32, #tpu.memory_space<vmem>>, %arg14: memref<1x64xf32, #tpu.memory_space<vmem>>, %arg15: memref<64x128xbf16, #tpu.memory_space<vmem>>, %arg16: memref<1x128xf32, #tpu.memory_space<vmem>>, %arg17: memref<128x64xbf16, #tpu.memory_space<vmem>>, %arg18: memref<1x64xf32, #tpu.memory_space<vmem>>, %arg19: memref<1x8x64xf32, #tpu.memory_space<vmem>>, %arg20: memref<4x16x16xf32, #tpu.memory_space<vmem>>, %arg21: memref<4x16x16xf32, #tpu.memory_space<vmem>>, %arg22: memref<4x8x16xf32, #tpu.memory_space<vmem>>, %arg23: memref<8x64xbf16, #tpu.memory_space<vmem>>, %arg24: memref<8x64xf32, #tpu.memory_space<vmem>>) attributes {dimension_semantics = [#tpu.dimension_semantics<parallel>, #tpu.dimension_semantics<arbitrary>, #tpu.dimension_semantics<arbitrary>], iteration_bounds = array<i64: 2, 2, 2>, scalar_prefetch = 0 : i64, scratch_operands = 5 : i64, tpu.core_type = #tpu.core_type<tc>, window_params = [{transform_indices = @transform_0, window_bounds = array<i64: 1, 16, 64>}, {pipeline_mode = #tpu.pipeline_mode<synchronous>, transform_indices = @transform_1, window_bounds = array<i64: 1, 64>}, {pipeline_mode = #tpu.pipeline_mode<synchronous>, transform_indices = @transform_2, window_bounds = array<i64: 1, 64>}, {pipeline_mode = #tpu.pipeline_mode<synchronous>, transform_indices = @transform_3, window_bounds = array<i64: 4, 64, 16>}, {pipeline_mode = #tpu.pipeline_mode<synchronous>, transform_indices = @transform_4, window_bounds = array<i64: 4, 1, 16>}, {pipeline_mode = #tpu.pipeline_mode<synchronous>, transform_indices = @transform_5, window_bounds = array<i64: 4, 64, 16>}, {pipeline_mode = #tpu.pipeline_mode<synchronous>, transform_indices = @transform_6, window_bounds = array<i64: 4, 64, 16>}, {pipeline_mode = #tpu.pipeline_mode<synchronous>, transform_indices = @transform_7, window_bounds = array<i64: 4, 1, 16>}, {pipeline_mode = #tpu.pipeline_mode<synchronous>, transform_indices = @transform_8, window_bounds = array<i64: 4, 16, 64>}, {pipeline_mode = #tpu.pipeline_mode<synchronous>, transform_indices = @transform_9, window_bounds = array<i64: 1, 64>}, {pipeline_mode = #tpu.pipeline_mode<synchronous>, transform_indices = @transform_10, window_bounds = array<i64: 1, 64>}, {pipeline_mode = #tpu.pipeline_mode<synchronous>, transform_indices = @transform_11, window_bounds = array<i64: 1, 64>}, {transform_indices = @transform_12, window_bounds = array<i64: 64, 128>}, {transform_indices = @transform_13, window_bounds = array<i64: 1, 128>}, {transform_indices = @transform_14, window_bounds = array<i64: 128, 64>}, {pipeline_mode = #tpu.pipeline_mode<synchronous>, transform_indices = @transform_15, window_bounds = array<i64: 1, 64>}, {transform_indices = @transform_16, window_bounds = array<i64: 1, 8, 64>}]} {
    %c0_i32 = arith.constant 0 : i32
    %0 = arith.cmpi eq, %arg1, %c0_i32 : i32
    %c0_i32_0 = arith.constant 0 : i32
    %1 = arith.cmpi eq, %arg2, %c0_i32_0 : i32
    %2 = arith.andi %0, %1 : i1
    %3 = arith.extui %2 : i1 to i32
    %c0_i32_1 = arith.constant 0 : i32
    %4 = arith.cmpi ne, %3, %c0_i32_1 : i32
    scf.if %4 {
      %c0_32 = arith.constant 0 : index
      %c0_33 = arith.constant 0 : index
      %c0_34 = arith.constant 0 : index
      %65 = vector.load %arg3[%c0_32, %c0_33, %c0_34] : memref<1x16x64xf32, #tpu.memory_space<vmem>>, vector<1x8x64xf32>
      %66 = vector.shape_cast %65 : vector<1x8x64xf32> to vector<8x64xf32>
      %c0_35 = arith.constant 0 : index
      %c0_36 = arith.constant 0 : index
      %67 = vector.load %arg4[%c0_35, %c0_36] : memref<1x64xf32, #tpu.memory_space<vmem>>, vector<1x64xf32>
      %68 = vector.shape_cast %67 : vector<1x64xf32> to vector<64xf32>
      %c0_37 = arith.constant 0 : index
      %c0_38 = arith.constant 0 : index
      %69 = vector.load %arg5[%c0_37, %c0_38] : memref<1x64xf32, #tpu.memory_space<vmem>>, vector<1x64xf32>
      %70 = vector.shape_cast %69 : vector<1x64xf32> to vector<64xf32>
      %cst_39 = arith.constant dense<0.000000e+00> : vector<8xf32>
      %71 = vector.multi_reduction <add>, %66, %cst_39 [1] : vector<8x64xf32> to vector<8xf32>
      %72 = vector.shape_cast %71 : vector<8xf32> to vector<8x1xf32>
      %cst_40 = arith.constant 6.400000e+01 : f32
      %73 = vector.broadcast %cst_40 : f32 to vector<8x1xf32>
      %74 = arith.divf %72, %73 : vector<8x1xf32>
      %75 = vector.broadcast %74 : vector<8x1xf32> to vector<8x64xf32>
      %76 = arith.subf %66, %75 : vector<8x64xf32>
      %77 = arith.mulf %76, %76 : vector<8x64xf32>
      %cst_41 = arith.constant dense<0.000000e+00> : vector<8xf32>
      %78 = vector.multi_reduction <add>, %77, %cst_41 [1] : vector<8x64xf32> to vector<8xf32>
      %79 = vector.shape_cast %78 : vector<8xf32> to vector<8x1xf32>
      %cst_42 = arith.constant 6.400000e+01 : f32
      %80 = vector.broadcast %cst_42 : f32 to vector<8x1xf32>
      %81 = arith.divf %79, %80 : vector<8x1xf32>
      %82 = vector.broadcast %74 : vector<8x1xf32> to vector<8x64xf32>
      %83 = arith.subf %66, %82 : vector<8x64xf32>
      %cst_43 = arith.constant 9.99999974E-6 : f32
      %84 = vector.broadcast %cst_43 : f32 to vector<8x1xf32>
      %85 = arith.addf %81, %84 : vector<8x1xf32>
      %86 = math.rsqrt %85 : vector<8x1xf32>
      %87 = vector.broadcast %86 : vector<8x1xf32> to vector<8x64xf32>
      %88 = arith.mulf %83, %87 : vector<8x64xf32>
      %89 = vector.shape_cast %68 : vector<64xf32> to vector<1x64xf32>
      %90 = vector.broadcast %89 : vector<1x64xf32> to vector<8x64xf32>
      %91 = arith.mulf %88, %90 : vector<8x64xf32>
      %92 = vector.shape_cast %70 : vector<64xf32> to vector<1x64xf32>
      %93 = vector.broadcast %92 : vector<1x64xf32> to vector<8x64xf32>
      %94 = arith.addf %91, %93 : vector<8x64xf32>
      %95 = arith.truncf %94 : vector<8x64xf32> to vector<8x64xbf16>
      %c0_i32_44 = arith.constant 0 : i32
      %c4_i32 = arith.constant 4 : i32
      %96 = arith.addi %c0_i32_44, %c4_i32 : i32
      %c1_i32_45 = arith.constant 1 : i32
      scf.for %arg25 = %c0_i32_44 to %96 step %c1_i32_45  : i32 {
        %129 = arith.index_cast %arg25 : i32 to index
        %c0_62 = arith.constant 0 : index
        %c0_63 = arith.constant 0 : index
        %130 = vector.load %arg8[%129, %c0_62, %c0_63] : memref<4x64x16xbf16, #tpu.memory_space<vmem>>, vector<1x64x16xbf16>
        %131 = vector.shape_cast %130 : vector<1x64x16xbf16> to vector<64x16xbf16>
        %cst_64 = arith.constant dense<0.000000e+00> : vector<8x16xf32>
        %132 = tpu.matmul %95, %131, %cst_64 {dimension_numbers = #tpu.dot_dimension_numbers<[1], [0], [0], [1], [0, 0, 1, 1], [], []>} : vector<8x64xbf16>, vector<64x16xbf16>, vector<8x16xf32> -> vector<8x16xf32>
        %cst_65 = arith.constant 5.000000e-01 : f32
        %133 = vector.broadcast %cst_65 : f32 to vector<8x16xf32>
        %134 = arith.mulf %132, %133 : vector<8x16xf32>
        %135 = arith.index_cast %arg25 : i32 to index
        %c0_66 = arith.constant 0 : index
        %c0_67 = arith.constant 0 : index
        %136 = vector.load %arg20[%135, %c0_66, %c0_67] : memref<4x16x16xf32, #tpu.memory_space<vmem>>, vector<1x8x16xf32>
        %137 = vector.shape_cast %136 : vector<1x8x16xf32> to vector<8x16xf32>
        %138 = vector.shape_cast %134 : vector<8x16xf32> to vector<1x8x16xf32>
        tpu.vector_store %arg20[%135, %c0_66, %c0_67], %138 {strides = array<i32>} : memref<4x16x16xf32, #tpu.memory_space<vmem>>, vector<1x8x16xf32>,
        %139 = arith.index_cast %arg25 : i32 to index
        %c0_68 = arith.constant 0 : index
        %c0_69 = arith.constant 0 : index
        %140 = vector.load %arg9[%139, %c0_68, %c0_69] : memref<4x64x16xbf16, #tpu.memory_space<vmem>>, vector<1x64x16xbf16>
        %141 = vector.shape_cast %140 : vector<1x64x16xbf16> to vector<64x16xbf16>
        %cst_70 = arith.constant dense<0.000000e+00> : vector<8x16xf32>
        %142 = tpu.matmul %95, %141, %cst_70 {dimension_numbers = #tpu.dot_dimension_numbers<[1], [0], [0], [1], [0, 0, 1, 1], [], []>} : vector<8x64xbf16>, vector<64x16xbf16>, vector<8x16xf32> -> vector<8x16xf32>
        %143 = arith.index_cast %arg25 : i32 to index
        %c0_71 = arith.constant 0 : index
        %c0_72 = arith.constant 0 : index
        %144 = vector.load %arg10[%143, %c0_71, %c0_72] : memref<4x1x16xf32, #tpu.memory_space<vmem>>, vector<1x1x16xf32>
        %145 = vector.shape_cast %144 : vector<1x1x16xf32> to vector<1x16xf32>
        %146 = vector.broadcast %145 : vector<1x16xf32> to vector<8x16xf32>
        %147 = arith.addf %142, %146 : vector<8x16xf32>
        %148 = arith.index_cast %arg25 : i32 to index
        %c0_73 = arith.constant 0 : index
        %c0_74 = arith.constant 0 : index
        %149 = vector.load %arg21[%148, %c0_73, %c0_74] : memref<4x16x16xf32, #tpu.memory_space<vmem>>, vector<1x8x16xf32>
        %150 = vector.shape_cast %149 : vector<1x8x16xf32> to vector<8x16xf32>
        %151 = vector.shape_cast %147 : vector<8x16xf32> to vector<1x8x16xf32>
        tpu.vector_store %arg21[%148, %c0_73, %c0_74], %151 {strides = array<i32>} : memref<4x16x16xf32, #tpu.memory_space<vmem>>, vector<1x8x16xf32>,
      }
      %c4_i32_46 = arith.constant 4 : i32
      %c0_47 = arith.constant 0 : index
      %c8 = arith.constant 8 : index
      %c0_48 = arith.constant 0 : index
      %97 = vector.load %arg3[%c0_47, %c8, %c0_48] : memref<1x16x64xf32, #tpu.memory_space<vmem>>, vector<1x8x64xf32>
      %98 = vector.shape_cast %97 : vector<1x8x64xf32> to vector<8x64xf32>
      %c0_49 = arith.constant 0 : index
      %c0_50 = arith.constant 0 : index
      %99 = vector.load %arg4[%c0_49, %c0_50] : memref<1x64xf32, #tpu.memory_space<vmem>>, vector<1x64xf32>
      %100 = vector.shape_cast %99 : vector<1x64xf32> to vector<64xf32>
      %c0_51 = arith.constant 0 : index
      %c0_52 = arith.constant 0 : index
      %101 = vector.load %arg5[%c0_51, %c0_52] : memref<1x64xf32, #tpu.memory_space<vmem>>, vector<1x64xf32>
      %102 = vector.shape_cast %101 : vector<1x64xf32> to vector<64xf32>
      %cst_53 = arith.constant dense<0.000000e+00> : vector<8xf32>
      %103 = vector.multi_reduction <add>, %98, %cst_53 [1] : vector<8x64xf32> to vector<8xf32>
      %104 = vector.shape_cast %103 : vector<8xf32> to vector<8x1xf32>
      %cst_54 = arith.constant 6.400000e+01 : f32
      %105 = vector.broadcast %cst_54 : f32 to vector<8x1xf32>
      %106 = arith.divf %104, %105 : vector<8x1xf32>
      %107 = vector.broadcast %106 : vector<8x1xf32> to vector<8x64xf32>
      %108 = arith.subf %98, %107 : vector<8x64xf32>
      %109 = arith.mulf %108, %108 : vector<8x64xf32>
      %cst_55 = arith.constant dense<0.000000e+00> : vector<8xf32>
      %110 = vector.multi_reduction <add>, %109, %cst_55 [1] : vector<8x64xf32> to vector<8xf32>
      %111 = vector.shape_cast %110 : vector<8xf32> to vector<8x1xf32>
      %cst_56 = arith.constant 6.400000e+01 : f32
      %112 = vector.broadcast %cst_56 : f32 to vector<8x1xf32>
      %113 = arith.divf %111, %112 : vector<8x1xf32>
      %114 = vector.broadcast %106 : vector<8x1xf32> to vector<8x64xf32>
      %115 = arith.subf %98, %114 : vector<8x64xf32>
      %cst_57 = arith.constant 9.99999974E-6 : f32
      %116 = vector.broadcast %cst_57 : f32 to vector<8x1xf32>
      %117 = arith.addf %113, %116 : vector<8x1xf32>
      %118 = math.rsqrt %117 : vector<8x1xf32>
      %119 = vector.broadcast %118 : vector<8x1xf32> to vector<8x64xf32>
      %120 = arith.mulf %115, %119 : vector<8x64xf32>
      %121 = vector.shape_cast %100 : vector<64xf32> to vector<1x64xf32>
      %122 = vector.broadcast %121 : vector<1x64xf32> to vector<8x64xf32>
      %123 = arith.mulf %120, %122 : vector<8x64xf32>
      %124 = vector.shape_cast %102 : vector<64xf32> to vector<1x64xf32>
      %125 = vector.broadcast %124 : vector<1x64xf32> to vector<8x64xf32>
      %126 = arith.addf %123, %125 : vector<8x64xf32>
      %127 = arith.truncf %126 : vector<8x64xf32> to vector<8x64xbf16>
      %c0_i32_58 = arith.constant 0 : i32
      %c4_i32_59 = arith.constant 4 : i32
      %128 = arith.addi %c0_i32_58, %c4_i32_59 : i32
      %c1_i32_60 = arith.constant 1 : i32
      scf.for %arg25 = %c0_i32_58 to %128 step %c1_i32_60  : i32 {
        %129 = arith.index_cast %arg25 : i32 to index
        %c0_62 = arith.constant 0 : index
        %c0_63 = arith.constant 0 : index
        %130 = vector.load %arg8[%129, %c0_62, %c0_63] : memref<4x64x16xbf16, #tpu.memory_space<vmem>>, vector<1x64x16xbf16>
        %131 = vector.shape_cast %130 : vector<1x64x16xbf16> to vector<64x16xbf16>
        %cst_64 = arith.constant dense<0.000000e+00> : vector<8x16xf32>
        %132 = tpu.matmul %127, %131, %cst_64 {dimension_numbers = #tpu.dot_dimension_numbers<[1], [0], [0], [1], [0, 0, 1, 1], [], []>} : vector<8x64xbf16>, vector<64x16xbf16>, vector<8x16xf32> -> vector<8x16xf32>
        %cst_65 = arith.constant 5.000000e-01 : f32
        %133 = vector.broadcast %cst_65 : f32 to vector<8x16xf32>
        %134 = arith.mulf %132, %133 : vector<8x16xf32>
        %135 = arith.index_cast %arg25 : i32 to index
        %c8_66 = arith.constant 8 : index
        %c0_67 = arith.constant 0 : index
        %136 = vector.load %arg20[%135, %c8_66, %c0_67] : memref<4x16x16xf32, #tpu.memory_space<vmem>>, vector<1x8x16xf32>
        %137 = vector.shape_cast %136 : vector<1x8x16xf32> to vector<8x16xf32>
        %138 = vector.shape_cast %134 : vector<8x16xf32> to vector<1x8x16xf32>
        tpu.vector_store %arg20[%135, %c8_66, %c0_67], %138 {strides = array<i32>} : memref<4x16x16xf32, #tpu.memory_space<vmem>>, vector<1x8x16xf32>,
        %139 = arith.index_cast %arg25 : i32 to index
        %c0_68 = arith.constant 0 : index
        %c0_69 = arith.constant 0 : index
        %140 = vector.load %arg9[%139, %c0_68, %c0_69] : memref<4x64x16xbf16, #tpu.memory_space<vmem>>, vector<1x64x16xbf16>
        %141 = vector.shape_cast %140 : vector<1x64x16xbf16> to vector<64x16xbf16>
        %cst_70 = arith.constant dense<0.000000e+00> : vector<8x16xf32>
        %142 = tpu.matmul %127, %141, %cst_70 {dimension_numbers = #tpu.dot_dimension_numbers<[1], [0], [0], [1], [0, 0, 1, 1], [], []>} : vector<8x64xbf16>, vector<64x16xbf16>, vector<8x16xf32> -> vector<8x16xf32>
        %143 = arith.index_cast %arg25 : i32 to index
        %c0_71 = arith.constant 0 : index
        %c0_72 = arith.constant 0 : index
        %144 = vector.load %arg10[%143, %c0_71, %c0_72] : memref<4x1x16xf32, #tpu.memory_space<vmem>>, vector<1x1x16xf32>
        %145 = vector.shape_cast %144 : vector<1x1x16xf32> to vector<1x16xf32>
        %146 = vector.broadcast %145 : vector<1x16xf32> to vector<8x16xf32>
        %147 = arith.addf %142, %146 : vector<8x16xf32>
        %148 = arith.index_cast %arg25 : i32 to index
        %c8_73 = arith.constant 8 : index
        %c0_74 = arith.constant 0 : index
        %149 = vector.load %arg21[%148, %c8_73, %c0_74] : memref<4x16x16xf32, #tpu.memory_space<vmem>>, vector<1x8x16xf32>
        %150 = vector.shape_cast %149 : vector<1x8x16xf32> to vector<8x16xf32>
        %151 = vector.shape_cast %147 : vector<8x16xf32> to vector<1x8x16xf32>
        tpu.vector_store %arg21[%148, %c8_73, %c0_74], %151 {strides = array<i32>} : memref<4x16x16xf32, #tpu.memory_space<vmem>>, vector<1x8x16xf32>,
      }
      %c4_i32_61 = arith.constant 4 : i32
    } else {
    }
    %c0_i32_2 = arith.constant 0 : i32
    %5 = arith.cmpi eq, %arg2, %c0_i32_2 : i32
    %6 = arith.extui %5 : i1 to i32
    %c0_i32_3 = arith.constant 0 : i32
    %7 = arith.cmpi ne, %6, %c0_i32_3 : i32
    scf.if %7 {
      %c8_i32 = arith.constant 8 : i32
      %65 = arith.muli %arg1, %c8_i32 : i32
      %66 = tpu.assume_multiple %65, 8 : i32
      %c0_32 = arith.constant 0 : index
      %67 = arith.index_cast %66 : i32 to index
      %c0_33 = arith.constant 0 : index
      %68 = vector.load %arg3[%c0_32, %67, %c0_33] : memref<1x16x64xf32, #tpu.memory_space<vmem>>, vector<1x8x64xf32>
      %69 = vector.shape_cast %68 : vector<1x8x64xf32> to vector<8x64xf32>
      %c0_34 = arith.constant 0 : index
      %c0_35 = arith.constant 0 : index
      %70 = vector.load %arg4[%c0_34, %c0_35] : memref<1x64xf32, #tpu.memory_space<vmem>>, vector<1x64xf32>
      %71 = vector.shape_cast %70 : vector<1x64xf32> to vector<64xf32>
      %c0_36 = arith.constant 0 : index
      %c0_37 = arith.constant 0 : index
      %72 = vector.load %arg5[%c0_36, %c0_37] : memref<1x64xf32, #tpu.memory_space<vmem>>, vector<1x64xf32>
      %73 = vector.shape_cast %72 : vector<1x64xf32> to vector<64xf32>
      %cst_38 = arith.constant dense<0.000000e+00> : vector<8xf32>
      %74 = vector.multi_reduction <add>, %69, %cst_38 [1] : vector<8x64xf32> to vector<8xf32>
      %75 = vector.shape_cast %74 : vector<8xf32> to vector<8x1xf32>
      %cst_39 = arith.constant 6.400000e+01 : f32
      %76 = vector.broadcast %cst_39 : f32 to vector<8x1xf32>
      %77 = arith.divf %75, %76 : vector<8x1xf32>
      %78 = vector.broadcast %77 : vector<8x1xf32> to vector<8x64xf32>
      %79 = arith.subf %69, %78 : vector<8x64xf32>
      %80 = arith.mulf %79, %79 : vector<8x64xf32>
      %cst_40 = arith.constant dense<0.000000e+00> : vector<8xf32>
      %81 = vector.multi_reduction <add>, %80, %cst_40 [1] : vector<8x64xf32> to vector<8xf32>
      %82 = vector.shape_cast %81 : vector<8xf32> to vector<8x1xf32>
      %cst_41 = arith.constant 6.400000e+01 : f32
      %83 = vector.broadcast %cst_41 : f32 to vector<8x1xf32>
      %84 = arith.divf %82, %83 : vector<8x1xf32>
      %85 = vector.broadcast %77 : vector<8x1xf32> to vector<8x64xf32>
      %86 = arith.subf %69, %85 : vector<8x64xf32>
      %cst_42 = arith.constant 9.99999974E-6 : f32
      %87 = vector.broadcast %cst_42 : f32 to vector<8x1xf32>
      %88 = arith.addf %84, %87 : vector<8x1xf32>
      %89 = math.rsqrt %88 : vector<8x1xf32>
      %90 = vector.broadcast %89 : vector<8x1xf32> to vector<8x64xf32>
      %91 = arith.mulf %86, %90 : vector<8x64xf32>
      %92 = vector.shape_cast %71 : vector<64xf32> to vector<1x64xf32>
      %93 = vector.broadcast %92 : vector<1x64xf32> to vector<8x64xf32>
      %94 = arith.mulf %91, %93 : vector<8x64xf32>
      %95 = vector.shape_cast %73 : vector<64xf32> to vector<1x64xf32>
      %96 = vector.broadcast %95 : vector<1x64xf32> to vector<8x64xf32>
      %97 = arith.addf %94, %96 : vector<8x64xf32>
      %98 = arith.truncf %97 : vector<8x64xf32> to vector<8x64xbf16>
      %c0_i32_43 = arith.constant 0 : i32
      %c4_i32 = arith.constant 4 : i32
      %99 = arith.addi %c0_i32_43, %c4_i32 : i32
      %c1_i32_44 = arith.constant 1 : i32
      scf.for %arg25 = %c0_i32_43 to %99 step %c1_i32_44  : i32 {
        %158 = arith.index_cast %arg25 : i32 to index
        %c0_83 = arith.constant 0 : index
        %c0_84 = arith.constant 0 : index
        %159 = vector.load %arg6[%158, %c0_83, %c0_84] : memref<4x64x16xbf16, #tpu.memory_space<vmem>>, vector<1x64x16xbf16>
        %160 = vector.shape_cast %159 : vector<1x64x16xbf16> to vector<64x16xbf16>
        %cst_85 = arith.constant dense<0.000000e+00> : vector<8x16xf32>
        %161 = tpu.matmul %98, %160, %cst_85 {dimension_numbers = #tpu.dot_dimension_numbers<[1], [0], [0], [1], [0, 0, 1, 1], [], []>} : vector<8x64xbf16>, vector<64x16xbf16>, vector<8x16xf32> -> vector<8x16xf32>
        %162 = arith.index_cast %arg25 : i32 to index
        %c0_86 = arith.constant 0 : index
        %c0_87 = arith.constant 0 : index
        %163 = vector.load %arg7[%162, %c0_86, %c0_87] : memref<4x1x16xf32, #tpu.memory_space<vmem>>, vector<1x1x16xf32>
        %164 = vector.shape_cast %163 : vector<1x1x16xf32> to vector<1x16xf32>
        %165 = vector.broadcast %164 : vector<1x16xf32> to vector<8x16xf32>
        %166 = arith.addf %161, %165 : vector<8x16xf32>
        %cst_88 = arith.constant 5.000000e-01 : f32
        %167 = vector.broadcast %cst_88 : f32 to vector<8x16xf32>
        %168 = arith.mulf %166, %167 : vector<8x16xf32>
        %169 = arith.index_cast %arg25 : i32 to index
        %c0_89 = arith.constant 0 : index
        %c0_90 = arith.constant 0 : index
        %170 = vector.load %arg22[%169, %c0_89, %c0_90] : memref<4x8x16xf32, #tpu.memory_space<vmem>>, vector<1x8x16xf32>
        %171 = vector.shape_cast %170 : vector<1x8x16xf32> to vector<8x16xf32>
        %172 = vector.shape_cast %168 : vector<8x16xf32> to vector<1x8x16xf32>
        tpu.vector_store %arg22[%169, %c0_89, %c0_90], %172 {strides = array<i32>} : memref<4x8x16xf32, #tpu.memory_space<vmem>>, vector<1x8x16xf32>,
      }
      %c4_i32_45 = arith.constant 4 : i32
      %c0_46 = arith.constant 0 : index
      %c0_47 = arith.constant 0 : index
      %c0_48 = arith.constant 0 : index
      %100 = vector.load %arg22[%c0_46, %c0_47, %c0_48] : memref<4x8x16xf32, #tpu.memory_space<vmem>>, vector<4x8x16xf32>
      %101 = arith.truncf %100 : vector<4x8x16xf32> to vector<4x8x16xbf16>
      %c0_49 = arith.constant 0 : index
      %c0_50 = arith.constant 0 : index
      %c0_51 = arith.constant 0 : index
      %102 = vector.load %arg20[%c0_49, %c0_50, %c0_51] : memref<4x16x16xf32, #tpu.memory_space<vmem>>, vector<4x16x16xf32>
      %103 = arith.truncf %102 : vector<4x16x16xf32> to vector<4x16x16xbf16>
      "tpu.trace_start"() <{level = 10 : i32, message = "hqd,hkd->hqk"}> : () -> ()
      %cst_52 = arith.constant dense<0.000000e+00> : vector<4x8x16xf32>
      %104 = tpu.matmul %101, %103, %cst_52 {dimension_numbers = #tpu.dot_dimension_numbers<[2], [2], [1], [1], [0, 0, 0, 1, 1, 1], [0], [0]>} : vector<4x8x16xbf16>, vector<4x16x16xbf16>, vector<4x8x16xf32> -> vector<4x8x16xf32>
      "tpu.trace_stop"() : () -> ()
      %cst_53 = arith.constant dense<0xFF800000> : vector<4x8xf32>
      %105 = vector.multi_reduction <maximumf>, %104, %cst_53 [2] : vector<4x8x16xf32> to vector<4x8xf32>
      %106 = vector.shape_cast %105 : vector<4x8xf32> to vector<4x8x1xf32>
      %107 = vector.broadcast %106 : vector<4x8x1xf32> to vector<4x8x16xf32>
      %108 = arith.subf %104, %107 : vector<4x8x16xf32>
      %109 = math.exp %108 : vector<4x8x16xf32>
      %cst_54 = arith.constant dense<0.000000e+00> : vector<4x8xf32>
      %110 = vector.multi_reduction <add>, %109, %cst_54 [2] : vector<4x8x16xf32> to vector<4x8xf32>
      %111 = vector.shape_cast %110 : vector<4x8xf32> to vector<4x8x1xf32>
      %112 = tpu.reciprocal %111 {approx = true} : vector<4x8x1xf32> -> vector<4x8x1xf32>
      %113 = vector.broadcast %112 : vector<4x8x1xf32> to vector<4x8x16xf32>
      %114 = arith.mulf %109, %113 : vector<4x8x16xf32>
      %115 = arith.truncf %114 : vector<4x8x16xf32> to vector<4x8x16xbf16>
      %c0_55 = arith.constant 0 : index
      %c0_56 = arith.constant 0 : index
      %c0_57 = arith.constant 0 : index
      %116 = vector.load %arg21[%c0_55, %c0_56, %c0_57] : memref<4x16x16xf32, #tpu.memory_space<vmem>>, vector<4x16x16xf32>
      %117 = arith.truncf %116 : vector<4x16x16xf32> to vector<4x16x16xbf16>
      "tpu.trace_start"() <{level = 10 : i32, message = "hqk,hkd->hqd"}> : () -> ()
      %cst_58 = arith.constant dense<0.000000e+00> : vector<4x8x16xf32>
      %118 = tpu.matmul %115, %117, %cst_58 {dimension_numbers = #tpu.dot_dimension_numbers<[2], [1], [1], [2], [0, 0, 0, 1, 1, 2], [0], [0]>} : vector<4x8x16xbf16>, vector<4x16x16xbf16>, vector<4x8x16xf32> -> vector<4x8x16xf32>
      "tpu.trace_stop"() : () -> ()
      %c0_59 = arith.constant 0 : index
      %c0_60 = arith.constant 0 : index
      %c0_61 = arith.constant 0 : index
      %119 = vector.load %arg22[%c0_59, %c0_60, %c0_61] : memref<4x8x16xf32, #tpu.memory_space<vmem>>, vector<4x8x16xf32>
      tpu.vector_store %arg22[%c0_59, %c0_60, %c0_61], %118 {strides = array<i32>} : memref<4x8x16xf32, #tpu.memory_space<vmem>>, vector<4x8x16xf32>,
      %c0_62 = arith.constant 0 : index
      %c0_63 = arith.constant 0 : index
      %120 = vector.load %arg12[%c0_62, %c0_63] : memref<1x64xf32, #tpu.memory_space<vmem>>, vector<1x64xf32>
      %121 = vector.shape_cast %120 : vector<1x64xf32> to vector<64xf32>
      %122 = vector.shape_cast %121 : vector<64xf32> to vector<1x64xf32>
      %123 = vector.broadcast %122 : vector<1x64xf32> to vector<8x64xf32>
      %124 = arith.addf %69, %123 : vector<8x64xf32>
      %c0_64 = arith.constant 0 : index
      %c0_65 = arith.constant 0 : index
      %125 = vector.load %arg24[%c0_64, %c0_65] : memref<8x64xf32, #tpu.memory_space<vmem>>, vector<8x64xf32>
      tpu.vector_store %arg24[%c0_64, %c0_65], %124 {strides = array<i32>} : memref<8x64xf32, #tpu.memory_space<vmem>>, vector<8x64xf32>,
      %c0_i32_66 = arith.constant 0 : i32
      %c4_i32_67 = arith.constant 4 : i32
      %126 = arith.addi %c0_i32_66, %c4_i32_67 : i32
      %c1_i32_68 = arith.constant 1 : i32
      scf.for %arg25 = %c0_i32_66 to %126 step %c1_i32_68  : i32 {
        %c0_83 = arith.constant 0 : index
        %c0_84 = arith.constant 0 : index
        %158 = vector.load %arg24[%c0_83, %c0_84] : memref<8x64xf32, #tpu.memory_space<vmem>>, vector<8x64xf32>
        %159 = arith.index_cast %arg25 : i32 to index
        %c0_85 = arith.constant 0 : index
        %c0_86 = arith.constant 0 : index
        %160 = vector.load %arg22[%159, %c0_85, %c0_86] : memref<4x8x16xf32, #tpu.memory_space<vmem>>, vector<1x8x16xf32>
        %161 = vector.shape_cast %160 : vector<1x8x16xf32> to vector<8x16xf32>
        %162 = arith.truncf %161 : vector<8x16xf32> to vector<8x16xbf16>
        %163 = arith.index_cast %arg25 : i32 to index
        %c0_87 = arith.constant 0 : index
        %c0_88 = arith.constant 0 : index
        %164 = vector.load %arg11[%163, %c0_87, %c0_88] : memref<4x16x64xbf16, #tpu.memory_space<vmem>>, vector<1x16x64xbf16>
        %165 = vector.shape_cast %164 : vector<1x16x64xbf16> to vector<16x64xbf16>
        %cst_89 = arith.constant dense<0.000000e+00> : vector<8x64xf32>
        %166 = tpu.matmul %162, %165, %cst_89 {dimension_numbers = #tpu.dot_dimension_numbers<[1], [0], [0], [1], [0, 0, 1, 1], [], []>} : vector<8x16xbf16>, vector<16x64xbf16>, vector<8x64xf32> -> vector<8x64xf32>
        %167 = arith.addf %158, %166 : vector<8x64xf32>
        %c0_90 = arith.constant 0 : index
        %c0_91 = arith.constant 0 : index
        %168 = vector.load %arg24[%c0_90, %c0_91] : memref<8x64xf32, #tpu.memory_space<vmem>>, vector<8x64xf32>
        tpu.vector_store %arg24[%c0_90, %c0_91], %167 {strides = array<i32>} : memref<8x64xf32, #tpu.memory_space<vmem>>, vector<8x64xf32>,
      }
      %c4_i32_69 = arith.constant 4 : i32
      %c0_70 = arith.constant 0 : index
      %c0_71 = arith.constant 0 : index
      %127 = vector.load %arg24[%c0_70, %c0_71] : memref<8x64xf32, #tpu.memory_space<vmem>>, vector<8x64xf32>
      %c0_72 = arith.constant 0 : index
      %c0_73 = arith.constant 0 : index
      %128 = vector.load %arg13[%c0_72, %c0_73] : memref<1x64xf32, #tpu.memory_space<vmem>>, vector<1x64xf32>
      %129 = vector.shape_cast %128 : vector<1x64xf32> to vector<64xf32>
      %c0_74 = arith.constant 0 : index
      %c0_75 = arith.constant 0 : index
      %130 = vector.load %arg14[%c0_74, %c0_75] : memref<1x64xf32, #tpu.memory_space<vmem>>, vector<1x64xf32>
      %131 = vector.shape_cast %130 : vector<1x64xf32> to vector<64xf32>
      %cst_76 = arith.constant dense<0.000000e+00> : vector<8xf32>
      %132 = vector.multi_reduction <add>, %127, %cst_76 [1] : vector<8x64xf32> to vector<8xf32>
      %133 = vector.shape_cast %132 : vector<8xf32> to vector<8x1xf32>
      %cst_77 = arith.constant 6.400000e+01 : f32
      %134 = vector.broadcast %cst_77 : f32 to vector<8x1xf32>
      %135 = arith.divf %133, %134 : vector<8x1xf32>
      %136 = vector.broadcast %135 : vector<8x1xf32> to vector<8x64xf32>
      %137 = arith.subf %127, %136 : vector<8x64xf32>
      %138 = arith.mulf %137, %137 : vector<8x64xf32>
      %cst_78 = arith.constant dense<0.000000e+00> : vector<8xf32>
      %139 = vector.multi_reduction <add>, %138, %cst_78 [1] : vector<8x64xf32> to vector<8xf32>
      %140 = vector.shape_cast %139 : vector<8xf32> to vector<8x1xf32>
      %cst_79 = arith.constant 6.400000e+01 : f32
      %141 = vector.broadcast %cst_79 : f32 to vector<8x1xf32>
      %142 = arith.divf %140, %141 : vector<8x1xf32>
      %143 = vector.broadcast %135 : vector<8x1xf32> to vector<8x64xf32>
      %144 = arith.subf %127, %143 : vector<8x64xf32>
      %cst_80 = arith.constant 9.99999974E-6 : f32
      %145 = vector.broadcast %cst_80 : f32 to vector<8x1xf32>
      %146 = arith.addf %142, %145 : vector<8x1xf32>
      %147 = math.rsqrt %146 : vector<8x1xf32>
      %148 = vector.broadcast %147 : vector<8x1xf32> to vector<8x64xf32>
      %149 = arith.mulf %144, %148 : vector<8x64xf32>
      %150 = vector.shape_cast %129 : vector<64xf32> to vector<1x64xf32>
      %151 = vector.broadcast %150 : vector<1x64xf32> to vector<8x64xf32>
      %152 = arith.mulf %149, %151 : vector<8x64xf32>
      %153 = vector.shape_cast %131 : vector<64xf32> to vector<1x64xf32>
      %154 = vector.broadcast %153 : vector<1x64xf32> to vector<8x64xf32>
      %155 = arith.addf %152, %154 : vector<8x64xf32>
      %156 = arith.truncf %155 : vector<8x64xf32> to vector<8x64xbf16>
      %c0_81 = arith.constant 0 : index
      %c0_82 = arith.constant 0 : index
      %157 = vector.load %arg23[%c0_81, %c0_82] : memref<8x64xbf16, #tpu.memory_space<vmem>>, vector<8x64xbf16>
      tpu.vector_store %arg23[%c0_81, %c0_82], %156 {strides = array<i32>} : memref<8x64xbf16, #tpu.memory_space<vmem>>, vector<8x64xbf16>,
    } else {
    }
    %c0 = arith.constant 0 : index
    %c0_4 = arith.constant 0 : index
    %8 = vector.load %arg23[%c0, %c0_4] : memref<8x64xbf16, #tpu.memory_space<vmem>>, vector<8x64xbf16>
    %c0_5 = arith.constant 0 : index
    %c0_6 = arith.constant 0 : index
    %9 = vector.load %arg15[%c0_5, %c0_6] : memref<64x128xbf16, #tpu.memory_space<vmem>>, vector<64x128xbf16>
    %cst = arith.constant dense<0.000000e+00> : vector<8x128xf32>
    %10 = tpu.matmul %8, %9, %cst {dimension_numbers = #tpu.dot_dimension_numbers<[1], [0], [0], [1], [0, 0, 1, 1], [], []>} : vector<8x64xbf16>, vector<64x128xbf16>, vector<8x128xf32> -> vector<8x128xf32>
    %c0_7 = arith.constant 0 : index
    %c0_8 = arith.constant 0 : index
    %11 = vector.load %arg16[%c0_7, %c0_8] : memref<1x128xf32, #tpu.memory_space<vmem>>, vector<1x128xf32>
    %12 = vector.shape_cast %11 : vector<1x128xf32> to vector<128xf32>
    %13 = vector.shape_cast %12 : vector<128xf32> to vector<1x128xf32>
    %14 = vector.broadcast %13 : vector<1x128xf32> to vector<8x128xf32>
    %15 = arith.addf %10, %14 : vector<8x128xf32>
    %cst_9 = arith.constant 5.000000e-01 : f32
    %16 = vector.broadcast %cst_9 : f32 to vector<8x128xf32>
    %17 = arith.mulf %16, %15 : vector<8x128xf32>
    %cst_10 = arith.constant 0.707106769 : f32
    %18 = vector.broadcast %cst_10 : f32 to vector<8x128xf32>
    %19 = arith.mulf %15, %18 : vector<8x128xf32>
    %20 = math.absf %19 : vector<8x128xf32>
    %cst_11 = arith.constant 0.327591091 : f32
    %21 = vector.broadcast %cst_11 : f32 to vector<8x128xf32>
    %22 = arith.mulf %21, %20 : vector<8x128xf32>
    %cst_12 = arith.constant 1.000000e+00 : f32
    %23 = vector.broadcast %cst_12 : f32 to vector<8x128xf32>
    %24 = arith.addf %23, %22 : vector<8x128xf32>
    %cst_13 = arith.constant 1.000000e+00 : f32
    %25 = vector.broadcast %cst_13 : f32 to vector<8x128xf32>
    %26 = arith.divf %25, %24 : vector<8x128xf32>
    %cst_14 = arith.constant 1.06140542 : f32
    %27 = vector.broadcast %cst_14 : f32 to vector<8x128xf32>
    %28 = arith.mulf %27, %26 : vector<8x128xf32>
    %cst_15 = arith.constant -1.45315206 : f32
    %29 = vector.broadcast %cst_15 : f32 to vector<8x128xf32>
    %30 = arith.addf %28, %29 : vector<8x128xf32>
    %31 = arith.mulf %30, %26 : vector<8x128xf32>
    %cst_16 = arith.constant 1.42141378 : f32
    %32 = vector.broadcast %cst_16 : f32 to vector<8x128xf32>
    %33 = arith.addf %31, %32 : vector<8x128xf32>
    %34 = arith.mulf %33, %26 : vector<8x128xf32>
    %cst_17 = arith.constant -0.284496725 : f32
    %35 = vector.broadcast %cst_17 : f32 to vector<8x128xf32>
    %36 = arith.addf %34, %35 : vector<8x128xf32>
    %37 = arith.mulf %36, %26 : vector<8x128xf32>
    %cst_18 = arith.constant 0.254829586 : f32
    %38 = vector.broadcast %cst_18 : f32 to vector<8x128xf32>
    %39 = arith.addf %37, %38 : vector<8x128xf32>
    %40 = arith.mulf %39, %26 : vector<8x128xf32>
    %cst_19 = arith.constant 0.000000e+00 : f32
    %41 = vector.broadcast %cst_19 : f32 to vector<8x128xf32>
    %42 = arith.subf %41, %20 : vector<8x128xf32>
    %43 = arith.mulf %42, %20 : vector<8x128xf32>
    %44 = math.exp %43 : vector<8x128xf32>
    %45 = arith.mulf %40, %44 : vector<8x128xf32>
    %cst_20 = arith.constant 1.000000e+00 : f32
    %46 = vector.broadcast %cst_20 : f32 to vector<8x128xf32>
    %47 = arith.subf %46, %45 : vector<8x128xf32>
    %cst_21 = arith.constant 0.000000e+00 : f32
    %48 = vector.broadcast %cst_21 : f32 to vector<8x128xf32>
    %49 = arith.cmpf oge, %19, %48 : vector<8x128xf32>
    %cst_22 = arith.constant 0.000000e+00 : f32
    %50 = vector.broadcast %cst_22 : f32 to vector<8x128xf32>
    %51 = arith.subf %50, %47 : vector<8x128xf32>
    %52 = arith.select %49, %47, %51 : vector<8x128xi1>, vector<8x128xf32>
    %cst_23 = arith.constant 1.000000e+00 : f32
    %53 = vector.broadcast %cst_23 : f32 to vector<8x128xf32>
    %54 = arith.addf %53, %52 : vector<8x128xf32>
    %55 = arith.mulf %17, %54 : vector<8x128xf32>
    %56 = arith.truncf %55 : vector<8x128xf32> to vector<8x128xbf16>
    %c0_24 = arith.constant 0 : index
    %c0_25 = arith.constant 0 : index
    %57 = vector.load %arg24[%c0_24, %c0_25] : memref<8x64xf32, #tpu.memory_space<vmem>>, vector<8x64xf32>
    %c0_26 = arith.constant 0 : index
    %c0_27 = arith.constant 0 : index
    %58 = vector.load %arg17[%c0_26, %c0_27] : memref<128x64xbf16, #tpu.memory_space<vmem>>, vector<128x64xbf16>
    %cst_28 = arith.constant dense<0.000000e+00> : vector<8x64xf32>
    %59 = tpu.matmul %56, %58, %cst_28 {dimension_numbers = #tpu.dot_dimension_numbers<[1], [0], [0], [1], [0, 0, 1, 1], [], []>} : vector<8x128xbf16>, vector<128x64xbf16>, vector<8x64xf32> -> vector<8x64xf32>
    %60 = arith.addf %57, %59 : vector<8x64xf32>
    %c0_29 = arith.constant 0 : index
    %c0_30 = arith.constant 0 : index
    %61 = vector.load %arg24[%c0_29, %c0_30] : memref<8x64xf32, #tpu.memory_space<vmem>>, vector<8x64xf32>
    tpu.vector_store %arg24[%c0_29, %c0_30], %60 {strides = array<i32>} : memref<8x64xf32, #tpu.memory_space<vmem>>, vector<8x64xf32>,
    %c1_i32 = arith.constant 1 : i32
    %62 = arith.cmpi eq, %arg2, %c1_i32 : i32
    %63 = arith.extui %62 : i1 to i32
    %c0_i32_31 = arith.constant 0 : i32
    %64 = arith.cmpi ne, %63, %c0_i32_31 : i32
    scf.if %64 {
      %c0_32 = arith.constant 0 : index
      %c0_33 = arith.constant 0 : index
      %65 = vector.load %arg24[%c0_32, %c0_33] : memref<8x64xf32, #tpu.memory_space<vmem>>, vector<8x64xf32>
      %c0_34 = arith.constant 0 : index
      %c0_35 = arith.constant 0 : index
      %66 = vector.load %arg18[%c0_34, %c0_35] : memref<1x64xf32, #tpu.memory_space<vmem>>, vector<1x64xf32>
      %67 = vector.shape_cast %66 : vector<1x64xf32> to vector<64xf32>
      %68 = vector.shape_cast %67 : vector<64xf32> to vector<1x64xf32>
      %69 = vector.broadcast %68 : vector<1x64xf32> to vector<8x64xf32>
      %70 = arith.addf %65, %69 : vector<8x64xf32>
      %c0_36 = arith.constant 0 : index
      %c0_37 = arith.constant 0 : index
      %c0_38 = arith.constant 0 : index
      %71 = vector.load %arg19[%c0_36, %c0_37, %c0_38] : memref<1x8x64xf32, #tpu.memory_space<vmem>>, vector<1x8x64xf32>
      %72 = vector.shape_cast %71 : vector<1x8x64xf32> to vector<8x64xf32>
      %73 = vector.shape_cast %70 : vector<8x64xf32> to vector<1x8x64xf32>
      tpu.vector_store %arg19[%c0_36, %c0_37, %c0_38], %73 {strides = array<i32>} : memref<1x8x64xf32, #tpu.memory_space<vmem>>, vector<1x8x64xf32>,
    } else {
    }
    return
  }
  func.func @transform_0(%arg0: i32, %arg1: i32, %arg2: i32) -> (i32, i32, i32) {
    %c0_i32 = arith.constant 0 : i32
    %c0_i32_0 = arith.constant 0 : i32
    %c0_i32_1 = arith.constant 0 : i32
    return %arg0, %c0_i32, %c0_i32_0 : i32, i32, i32
  }
  func.func @transform_1(%arg0: i32, %arg1: i32, %arg2: i32) -> (i32, i32) {
    %c0_i32 = arith.constant 0 : i32
    %c0_i32_0 = arith.constant 0 : i32
    %c0_i32_1 = arith.constant 0 : i32
    return %c0_i32, %c0_i32_0 : i32, i32
  }
  func.func @transform_2(%arg0: i32, %arg1: i32, %arg2: i32) -> (i32, i32) {
    %c0_i32 = arith.constant 0 : i32
    %c0_i32_0 = arith.constant 0 : i32
    %c0_i32_1 = arith.constant 0 : i32
    return %c0_i32, %c0_i32_0 : i32, i32
  }
  func.func @transform_3(%arg0: i32, %arg1: i32, %arg2: i32) -> (i32, i32, i32) {
    %c0_i32 = arith.constant 0 : i32
    %c0_i32_0 = arith.constant 0 : i32
    %c0_i32_1 = arith.constant 0 : i32
    %c0_i32_2 = arith.constant 0 : i32
    return %c0_i32, %c0_i32_0, %c0_i32_1 : i32, i32, i32
  }
  func.func @transform_4(%arg0: i32, %arg1: i32, %arg2: i32) -> (i32, i32, i32) {
    %c0_i32 = arith.constant 0 : i32
    %c0_i32_0 = arith.constant 0 : i32
    %c0_i32_1 = arith.constant 0 : i32
    %c0_i32_2 = arith.constant 0 : i32
    return %c0_i32, %c0_i32_0, %c0_i32_1 : i32, i32, i32
  }
  func.func @transform_5(%arg0: i32, %arg1: i32, %arg2: i32) -> (i32, i32, i32) {
    %c0_i32 = arith.constant 0 : i32
    %c0_i32_0 = arith.constant 0 : i32
    %c0_i32_1 = arith.constant 0 : i32
    %c0_i32_2 = arith.constant 0 : i32
    return %c0_i32, %c0_i32_0, %c0_i32_1 : i32, i32, i32
  }
  func.func @transform_6(%arg0: i32, %arg1: i32, %arg2: i32) -> (i32, i32, i32) {
    %c0_i32 = arith.constant 0 : i32
    %c0_i32_0 = arith.constant 0 : i32
    %c0_i32_1 = arith.constant 0 : i32
    %c0_i32_2 = arith.constant 0 : i32
    return %c0_i32, %c0_i32_0, %c0_i32_1 : i32, i32, i32
  }
  func.func @transform_7(%arg0: i32, %arg1: i32, %arg2: i32) -> (i32, i32, i32) {
    %c0_i32 = arith.constant 0 : i32
    %c0_i32_0 = arith.constant 0 : i32
    %c0_i32_1 = arith.constant 0 : i32
    %c0_i32_2 = arith.constant 0 : i32
    return %c0_i32, %c0_i32_0, %c0_i32_1 : i32, i32, i32
  }
  func.func @transform_8(%arg0: i32, %arg1: i32, %arg2: i32) -> (i32, i32, i32) {
    %c0_i32 = arith.constant 0 : i32
    %c0_i32_0 = arith.constant 0 : i32
    %c0_i32_1 = arith.constant 0 : i32
    %c0_i32_2 = arith.constant 0 : i32
    return %c0_i32, %c0_i32_0, %c0_i32_1 : i32, i32, i32
  }
  func.func @transform_9(%arg0: i32, %arg1: i32, %arg2: i32) -> (i32, i32) {
    %c0_i32 = arith.constant 0 : i32
    %c0_i32_0 = arith.constant 0 : i32
    %c0_i32_1 = arith.constant 0 : i32
    return %c0_i32, %c0_i32_0 : i32, i32
  }
  func.func @transform_10(%arg0: i32, %arg1: i32, %arg2: i32) -> (i32, i32) {
    %c0_i32 = arith.constant 0 : i32
    %c0_i32_0 = arith.constant 0 : i32
    %c0_i32_1 = arith.constant 0 : i32
    return %c0_i32, %c0_i32_0 : i32, i32
  }
  func.func @transform_11(%arg0: i32, %arg1: i32, %arg2: i32) -> (i32, i32) {
    %c0_i32 = arith.constant 0 : i32
    %c0_i32_0 = arith.constant 0 : i32
    %c0_i32_1 = arith.constant 0 : i32
    return %c0_i32, %c0_i32_0 : i32, i32
  }
  func.func @transform_12(%arg0: i32, %arg1: i32, %arg2: i32) -> (i32, i32) {
    %c0_i32 = arith.constant 0 : i32
    %c0_i32_0 = arith.constant 0 : i32
    return %c0_i32, %arg2 : i32, i32
  }
  func.func @transform_13(%arg0: i32, %arg1: i32, %arg2: i32) -> (i32, i32) {
    %c0_i32 = arith.constant 0 : i32
    %c0_i32_0 = arith.constant 0 : i32
    return %c0_i32, %arg2 : i32, i32
  }
  func.func @transform_14(%arg0: i32, %arg1: i32, %arg2: i32) -> (i32, i32) {
    %c0_i32 = arith.constant 0 : i32
    %c0_i32_0 = arith.constant 0 : i32
    return %arg2, %c0_i32 : i32, i32
  }
  func.func @transform_15(%arg0: i32, %arg1: i32, %arg2: i32) -> (i32, i32) {
    %c0_i32 = arith.constant 0 : i32
    %c0_i32_0 = arith.constant 0 : i32
    %c0_i32_1 = arith.constant 0 : i32
    return %c0_i32, %c0_i32_0 : i32, i32
  }
  func.func @transform_16(%arg0: i32, %arg1: i32, %arg2: i32) -> (i32, i32, i32) {
    %c0_i32 = arith.constant 0 : i32
    %c0_i32_0 = arith.constant 0 : i32
    return %arg0, %arg1, %c0_i32 : i32, i32, i32
  }
}

</mosaic_0001>

<bundles_post_ra>
// kernel: tpu_custom_call.1
= control target key start
LH: loop header
LB: loop body
LE: loop exit
PB: predicated region body
PF: predicated region fallthrough
CT: control target
= control target key end

     0   :  { %s2852_s0 = inlined_call_operand.vmem [shape: f32[2,16,64], index: 0, kind: input, shape index: {}]   ;;  %s2853_s1 = inlined_call_operand.vmem [shape: f32[1,64], index: 1, kind: input, shape index: {}]   ;;  %s2854_s2 = inlined_call_operand.vmem [shape: f32[1,64], index: 2, kind: input, shape index: {}]   ;;  %s2855_s3 = inlined_call_operand.vmem [shape: bf16[4,64,16], index: 3, kind: input, shape index: {}]   ;;  %s2856_s4 = inlined_call_operand.vmem [shape: f32[4,1,16], index: 4, kind: input, shape index: {}]   ;;  %s2857_s5 = inlined_call_operand.vmem [shape: bf16[4,64,16], index: 5, kind: input, shape index: {}]   ;;  %s2858_s6 = inlined_call_operand.vmem [shape: bf16[4,64,16], index: 6, kind: input, shape index: {}]   ;;  %s2859_s7 = inlined_call_operand.vmem [shape: f32[4,1,16], index: 7, kind: input, shape index: {}]   ;;  %s2860_s8 = inlined_call_operand.vmem [shape: bf16[4,16,64], index: 8, kind: input, shape index: {}]   ;;  %s2861_s9 = inlined_call_operand.vmem [shape: f32[1,64], index: 9, kind: input, shape index: {}]   ;;  %s2862_s10 = inlined_call_operand.vmem [shape: f32[1,64], index: 10, kind: input, shape index: {}]   ;;  %s2863_s11 = inlined_call_operand.vmem [shape: f32[1,64], index: 11, kind: input, shape index: {}]   ;;  %s2864_s12 = inlined_call_operand.vmem [shape: bf16[64,256], index: 12, kind: input, shape index: {}]   ;;  %s2865_s13 = inlined_call_operand.vmem [shape: f32[1,256], index: 13, kind: input, shape index: {}]   ;;  %s2866_s14 = inlined_call_operand.vmem [shape: bf16[256,64], index: 14, kind: input, shape index: {}]   ;;  %s2867_s15 = inlined_call_operand.vmem [shape: f32[1,64], index: 15, kind: input, shape index: {}]   ;;  %s2868_s16 = inlined_call_operand.hbm [shape: f32[2,16,64], index: 16, kind: output, shape index: {}]  }
   0x1   :  { %2880 = sst [smem:[#allocation22_spill]] %s2852_s0 }
   0x2   :  { %2881 = sst [smem:[#allocation23_spill]] %s2855_s3 }
   0x3   :  { %2882 = sst [smem:[#allocation24_spill]] %s2856_s4 }
   0x4   :  { %2883 = sst [smem:[#allocation25_spill]] %s2859_s7 }
   0x5   :  { %2884 = sst [smem:[#allocation26_spill]] %s2860_s8 }
   0x6   :  { %2885 = sst [smem:[#allocation27_spill]] %s2861_s9 }
   0x7   :  { %2886 = sst [smem:[#allocation28_spill]] %s2862_s10 }
   0x8   :  { %2887 = sst [smem:[#allocation29_spill]] %s2863_s11 }
   0x9   :  { %2888 = sst [smem:[#allocation30_spill]] %s2864_s12 }
   0xa   :  { %2889 = sst [smem:[#allocation31_spill]] %s2867_s15 }
   0xb   :  { %2890 = sst [smem:[#allocation32_spill]] %s2868_s16 }
   0xc   :  { %21 = vsyncpa [#allocation9], 0 }
   0xd   :  { %23 = vsyncpa [#allocation9 + $0x1], 0  ;;  %s2476_s21 = smov 0   ;;  %s2478_s22 = smov 0  }
   0xe   :  { %s2480_s23 = smov 0   ;;  %s2482_s24 = smov 0  }
   0xf   :  { %s2484_s25 = smov 0   ;;  %s2486_s26 = smov 0  }
  0x10   :  { %s2488_s27 = smov 0   ;;  %s2490_s28 = smov 0  }
  0x11   :  { %s2492_s29 = smov 0   ;;  %s2494_s30 = smov 0  }
  0x12   :  { %s2496_s0 = smov 0   ;;  %s2498_s17 = smov 0  }
  0x13 LB: > { %2891 = sst [smem:[#allocation11_spill]] %s2335_s23  ;;  %s1825_s18 = sadd.s32 4294967295, %s2371_s17   ;;  %s2371_s17 = sphi %s2498_s17, %s29_s17   ;;  %s2367_s0 = sphi %s2496_s0, %s2929_s0   ;;  %s2363_s30 = sphi %s2494_s30, %s2928_s30   ;;  %s2359_s29 = sphi %s2492_s29, %s2927_s29   ;;  %s2355_s28 = sphi %s2490_s28, %s2926_s28   ;;  %s2351_s27 = sphi %s2488_s27, %s2925_s27   ;;  %s2347_s26 = sphi %s2486_s26, %s2924_s26   ;;  %s2343_s25 = sphi %s2484_s25, %s2923_s25   ;;  %s2339_s24 = sphi %s2482_s24, %s2922_s24   ;;  %s2335_s23 = sphi %s2480_s23, %s2921_s23   ;;  %s2331_s22 = sphi %s2478_s22, %s2931_s22   ;;  %s2327_s21 = sphi %s2476_s21, %s2930_s21  }
  0x14   : > { %2892 = sst [smem:[#allocation12_spill]] %s2343_s25  ;;  %s1826_s19 = sadd.s32 4294967294, %s2371_s17  }
  0x15   : > { %2893 = sst [smem:[#allocation13_spill]] %s2359_s29  ;;  %s41_s20 = sadd.s32 1, %s2359_s29 }
  0x16   : > { %2894 = sst [smem:[#allocation14_spill]] %s2363_s30  ;;  %p42_p0 = scmp.ge.s32.totalorder %s41_s20, 2 }
  0x17   : > { %2895 = sst [smem:[#allocation15_spill]] %s2367_s0  ;;  %s44_s16 = sadd.s32 1, %s2363_s30 }
  0x18   : > { %s48_s15 = sadd.s32 1, %s2367_s0  ;;  %p319_p1 = scmp.ne.s32.totalorder %s2343_s25, %s2339_s24 }
  0x19   : > { %s2933_s20 = smov (%p42_p0, %s41_s20), 0  ;;  %s2935_s16 = smov (!%p42_p0, %s44_s16), %s2363_s30 }
  0x1a   : > { %2896 = sst [smem:[#allocation16_spill]] %s2933_s20  ;;  %s309_s11 = ssub.s32 %s2359_s29, %s2933_s20 }
  0x1b   : > { %p320_p2 = scmp.eq.s32.totalorder %s2371_s17, 0  ;;  %p46_p3 = scmp.ge.s32.totalorder %s2935_s16, 2 }
  0x1c   : > { %p310_p4 = scmp.eq.s32.totalorder %s309_s11, 0  ;;  %s312_s10 = sadd.s32 1, %s2343_s25 }
  0x1d   : > { %p2550_p5 = por %p320_p2, %p319_p1  ;;  %s2937_s16 = smov (%p46_p3, %s2935_s16), 0 }
  0x1e   : > { %2898 = sst [smem:[#allocation17_spill]] %s2937_s16  ;;  %s2939_s15 = smov (!%p46_p3, %s48_s15), %s2367_s0 }
  0x1f   : > { %s2558_s9 = scalar_select %p310_p4, %s2343_s25, %s312_s10  }
  0x20   : > { %p50_p6 = scmp.ge.s32.totalorder %s2939_s15, 2  ;;  %s409_s4 = ssub.s32 %s2363_s30, %s2937_s16 }
  0x21   : > { %2899 = sst [smem:[#allocation18_spill]] %s2558_s9  ;;  %p423_p7 = scmp.ne.s32.totalorder %s2335_s23, %s2331_s22 }
  0x22   : > { %p424_p8 = scmp.eq.s32.totalorder %s1825_s18, 7  ;;  %s2941_s15 = smov (%p50_p6, %s2939_s15), 0 }
  0x23   : > { %2900 = sst [smem:[#allocation19_spill]] %s2941_s15  ;;  %p429_p10 = scmp.ne.s32.totalorder %s2331_s22, %s2327_s21 }
  0x24   : > { %p2566_p9 = por %p424_p8, %p423_p7  ;;  %s408_s20 = ssub.s32 %s2367_s0, %s2941_s15 }
  0x25   : > { %p430_p11 = scmp.eq.s32.totalorder %s1826_s19, 7  ;;  %s410_s3 = sor.u32 %s409_s4, %s408_s20 }
  0x26   : > { %s413_s7 = sadd.s32 1, %s2335_s23  ;;  %p411_p12 = scmp.eq.s32.totalorder %s410_s3, 0 }
  0x27   : > { %p2575_p13 = por %p430_p11, %p429_p10  ;;  %p1828_p0 = scmp.ge.s32.totalorder %s2371_s17, 8 }
  0x28   : > { %s2580_s16 = scalar_select %p411_p12, %s2335_s23, %s413_s7  }
  0x29   : > { %s2902_s10 = scalar_select %p2575_p13, 1, 0 }
  0x2a   : > { %2904 = sst [smem:[#allocation21_spill]] %s2580_s16  ;;  %482 = sbr.rel (%p1828_p0) target bundleno = 65 (0x41), region = 64 }
  0x2b   : > { %2903 = sst [smem:[#allocation20_spill]] %s2902_s10 }
  0x2f   : > { %493 = sbr.rel (!%p2550_p5) target bundleno = 65 (0x41), region = 72  ;;  %s495_s18 = sand.u32 (%p2550_p5), 1, %s2343_s25  }
  0x30   : > { %s1830_s15 = sshll.u32 (%p2550_p5), %s2359_s29, 2  ;;  %s1829_s19 = sshll.u32 (%p2550_p5), %s495_s18, 5 }
  0x31   : > { %s2905_s12 = sld [smem:[#allocation30_spill]] (%p2550_p5)  ;;  %s497_s0 = scalar_lea.vmem (%p2550_p5), [#allocation7], %s1829_s19 }
  0x37   : > { %s499_s3 = scalar_lea.vmem %s2905_s12, %s1830_s15 }
  0x38   : > { %v516_v0 = vld [vmem:[%s499_s3] sm:$0xf]  ;;  %v518_v1 = vld [vmem:[%s499_s3 + $0x8] sm:$0xf]  ;;  %v520_v2 = vld [vmem:[%s499_s3 + $0x10] sm:$0xf] }
  0x39   : > { %517 = vst [vmem:[%s497_s0] sm:$0xf] %v516_v0  ;;  %v522_v3 = vld [vmem:[%s499_s3 + $0x18] sm:$0xf]  ;;  %v524_v4 = vld [vmem:[%s499_s3 + $0x20] sm:$0xf] }
  0x3a   : > { %519 = vst [vmem:[%s497_s0 + $0x4] sm:$0xf] %v518_v1  ;;  %v526_v5 = vld [vmem:[%s499_s3 + $0x28] sm:$0xf]  ;;  %v528_v6 = vld [vmem:[%s499_s3 + $0x30] sm:$0xf] }
  0x3b   : > { %521 = vst [vmem:[%s497_s0 + $0x8] sm:$0xf] %v520_v2  ;;  %v530_v7 = vld [vmem:[%s499_s3 + $0x38] sm:$0xf] }
  0x3c   : > { %523 = vst [vmem:[%s497_s0 + $0xc] sm:$0xf] %v522_v3 }
  0x3d   : > { %525 = vst [vmem:[%s497_s0 + $0x10] sm:$0xf] %v524_v4 }
  0x3e   : > { %527 = vst [vmem:[%s497_s0 + $0x14] sm:$0xf] %v526_v5 }
  0x3f   : > { %529 = vst [vmem:[%s497_s0 + $0x18] sm:$0xf] %v528_v6 }
  0x40   : > { %531 = vst [vmem:[%s497_s0 + $0x1c] sm:$0xf] %v530_v7 }
  0x41 PF: > { %p1831_p1 = scmp.ge.s32.totalorder %s2371_s17, 1  ;;  %p585_p2 = scmp.lt.s32.totalorder %s2371_s17, 9 }
  0x43   : > { %p586_p3 = pnand %p1831_p1, %p585_p2 }
  0x44   : > { %s592_s7 = sand.u32 (!%p586_p3), 1, %s2339_s24   ;;  %s2876_s8 = sand.u32 (!%p586_p3), 1, %s2331_s22  }
  0x45   : > { %589 = sbr.rel (%p586_p3) target bundleno = 2540 (0x9ec), region = 121  ;;  %s1832_s15 = sshll.u32 (!%p586_p3), %s592_s7, 5 }
  0x46   : > { %s2596_s0 = sshll.u32 (!%p586_p3), %s2876_s8, 3  ;;  %p654_p4 = scmp.lt.s32.totalorder (!%p586_p3), %s2355_s28, 1 }
  0x47   : > { %p659_p5 = scmp.lt.s32.totalorder (!%p586_p3), %s2347_s26, 1  ;;  %s1836_s18 = sshll.u32 (!%p586_p3), %s2347_s26, 4 }
  0x48   : > { %p669_p6 = scmp.eq.s32.totalorder (!%p586_p3), %s2351_s27, 0  ;;  %p663_p7 = scmp.lt.s32.totalorder (!%p586_p3), %s1836_s18, 31 }
  0x49   : > { %s2906_s30 = sld [smem:[#allocation22_spill]] (!%p586_p3)  ;;  %p670_p8 = scmp.eq.s32.totalorder (!%p586_p3), %s2347_s26, 0 }
  0x4a   : > { %s655_s19 = scalar_select %p654_p4, %s2355_s28, 1 }
  0x4b   : > { %s2604_s4 = scalar_select %p659_p5, %s2347_s26, 1 }
  0x4c   : > { %s2006_s20 = sshll.u32 %s655_s19, 4  ;;  %s2943_s18 = smov (!%p663_p7, %s1836_s18), 31 }
  0x4d   : > { %s661_s8 = scalar_lea.vmem %s2865_s13, %s2604_s4  ;;  %s1837_s9 = sshll.u32 %s2943_s18, 2 }
  0x4e   : > { %s2619_s23 = scalar_lea.vmem %s2866_s14, %s1837_s9  ;;  %p671_p10 = pnand %p670_p8, %p669_p6 }
  0x4f   : > { %s2609_s24 = scalar_lea.vmem %s2906_s30, %s2006_s20  ;;  %s2621_s19 = scalar_lea.vmem [#allocation7], %s1832_s15 }
  0x50   : > { %s653_s10 = scalar_lea.vmem [#allocation8], %s2596_s0  ;;  %674 = sbr.rel (%p671_p10) target bundleno = 786 (0x312), region = 129 }
  0x51   : > { %s2637_s29 = smov (!%p671_p10), 0  }
  0x55   : > { %v675_v8 = vld [vmem:[%s2609_s24] sm:$0xff]  ;;  %vm678_vm0 = vcmask 523264   ;;  %v2389_v10 = vmov 64.0  }
  0x56   : > { %v679_v9 = vsel %vm678_vm0, %v675_v8, 0.0  ;;  %2185 = vrcp.f32 %v2389_v10  ;;  %v2183_v31 = vld [vmem:[%s2853_s1] ss:$0 sm:$0xff] }
  0x57   : > { %680 = vadd.xlane.f32.xlu0 %v679_v9  ;;  %v2184_v33 = vld [vmem:[%s2854_s2] ss:$0 sm:$0xff] }
  0x5c   : > { %v2186_v11 = vpop.eup %2185 }
  0x5d   : > { %v683_v12 = vmul.f32 64.0, %v2186_v11  ;;  %vm687_vm1 = vweird.f32 %v2186_v11 }
  0x5f   : > { %v684_v13 = vsub.f32 1.0, %v683_v12 }
  0x61   : > { %v685_v14 = vmul.f32 %v2186_v11, %v684_v13 }
  0x63   : > { %v686_v15 = vadd.f32 %v2186_v11, %v685_v14 }
  0x65   : > { %v2626_v16 = vsel %vm687_vm1, %v2186_v11, %v686_v15 }
  0xca   : > { %v681_v17 = vpop.xlane.xlu0 %680 }
  0xcb   : > { %v689_v18 = vmul.f32 %v2626_v16, %v681_v17 }
  0xcd   : > { %v690_v19 = vsub.f32 %v675_v8, %v689_v18 }
  0xcf   : > { %v691_v20 = vmul.f32 %v690_v19, %v690_v19 }
  0xd1   : > { %v692_v21 = vsel %vm678_vm0, %v691_v20, 0.0 }
  0xd2   : > { %693 = vadd.xlane.f32.xlu0 %v692_v21 }
 0x145   : > { %v694_v22 = vpop.xlane.xlu0 %693 }
 0x146   : > { %v695_v23 = vmul.f32 %v694_v22, %v2626_v16 }
 0x148   : > { %v696_v24 = vadd.f32 1e-05, %v695_v23 }
 0x14a   : > { %2187 = vrsqrt.f32 %v696_v24  ;;  %vm703_vm3 = vweird.f32 %v696_v24 }
 0x150   : > { %v2188_v25 = vpop.eup %2187 }
 0x151   : > { %v698_v26 = vmul.f32 %v2188_v25, %v696_v24  ;;  %vm704_vm2 = vweird.f32 %v2188_v25 }
 0x152   : > { %vm705_vm4 = vmor %vm703_vm3, %vm704_vm2 }
 0x153   : > { %v699_v27 = vmul.f32 %v2188_v25, %v698_v26 }
 0x155   : > { %v700_v28 = vmul.f32 0.5, %v699_v27 }
 0x157   : > { %v701_v29 = vsub.f32 1.5, %v700_v28 }
 0x159   : > { %v702_v30 = vmul.f32 %v2188_v25, %v701_v29 }
 0x15b   : > { %v706_v32 = vsel %vm705_vm4, %v2188_v25, %v702_v30 }
 0x15c   : > { %v707_v34 = vmul.f32 %v706_v32, %v690_v19 }
 0x15e   : > { %v711_v35 = vmul.f32 %v2183_v31, %v707_v34 }
 0x160   : > { %v715_v36 = vadd.f32 %v2184_v33, %v711_v35 }
 0x162   : > { %v716_v37 = vpack.c.bf16 %v715_v36, %v715_v36 }
 0x163 LB: >> { %s2007_s30 = sshll.u32 %s2375_s29, 5  ;;  %s2907_s25 = sld [smem:[#allocation25_spill]]  ;;  %vm777_vm5 = vcmask 130048   ;;  %s2375_s29 = sphi %s2637_s29, %s722_s29  }
 0x164   : >> { %s725_s20 = scalar_lea.vmem %s2857_s5, %s2007_s30  ;;  %s780_s9 = scalar_lea.vmem %s2858_s6, %s2007_s30 }
 0x165   : >> { %v2011_v38 = vld [vmem:[%s725_s20 + $0x18] sm:$0xff]  ;;  %v2010_v40 = vld [vmem:[%s725_s20 + $0x10] sm:$0xff]  ;;  %v2009_v42 = vld [vmem:[%s725_s20 + $0x8] sm:$0xff]  ;;  %s1857_s30 = sshll.u32 %s2375_s29, 4 }
 0x166   : >> { %v2016_v39 = vld [vmem:[%s780_s9 + $0x18] sm:$0xff]  ;;  %765 = vmatpush.bf16.msra.mxu0 %v2011_v38  ;;  %v2015_v41 = vld [vmem:[%s780_s9 + $0x10] sm:$0xff]  ;;  %v2014_v43 = vld [vmem:[%s780_s9 + $0x8] sm:$0xff]  ;;  %s776_s18 = scalar_lea.vmem [#allocation2], %s1857_s30 }
 0x167   : >> { %822 = vmatpush.bf16.msra.mxu1 %v2016_v39  ;;  %v2008_v44 = vld [vmem:[%s725_s20] sm:$0xff]  ;;  %s831_s20 = scalar_lea.vmem [#allocation3], %s1857_s30 }
 0x168   : >> { %v2013_v45 = vld [vmem:[%s780_s9] sm:$0xff] }
 0x169   : >> { %s789_s15 = scalar_lea.vmem %s2907_s25, %s2375_s29  ;;  %s722_s29 = sadd.s32 1, %s2375_s29  }
 0x16a   : >> { %766 = vmatpush.bf16.msra.mxu0 %v2010_v40  ;;  %v2189_v46 = vld [vmem:[%s789_s15] ss:$0 sm:$0xff]  ;;  %p719_p11 = scmp.ge.s32.totalorder %s722_s29, 4  }
 0x16b   : >> { %823 = vmatpush.bf16.msra.mxu1 %v2015_v41  ;;  %v833_v53 = vld [vmem:[%s2609_s24 + $0x8] sm:$0xff] (%p719_p11)  ;;  %v2190_v5 = vld [vmem:[%s2853_s1] ss:$0 sm:$0xff] (%p719_p11)  ;;  %s2672_s12 = smov (%p719_p11), 0  }
 0x16c   : > { %v836_v54 = vsel (%p719_p11), %vm678_vm0, %v833_v53, 0.0  ;;  %v2191_v7 = vld [vmem:[%s2854_s2] ss:$0 sm:$0xff] (%p719_p11) }
 0x16d   : > { %837 = vadd.xlane.f32.xlu0 (%p719_p11), %v836_v54 }
 0x16e   : >> { %767 = vmatpush.bf16.msra.mxu0 %v2009_v42 }
 0x16f   : >> { %824 = vmatpush.bf16.msra.mxu1 %v2014_v43 }
 0x172   : >> { %768 = vmatpush.bf16.msra.mxu0 %v2008_v44 }
 0x173   : >> { %825 = vmatpush.bf16.msra.mxu1 %v2013_v45 }
 0x175   : >> { %1856 = vmatmul.msk.bf16.vlgmr.msra.gmra.mxu0 %vm678_vm0, %v716_v37 }
 0x176   : >> { %1875 = vmatmul.msk.bf16.vlgmr.msra.gmra.mxu1 %vm678_vm0, %v716_v37 }
 0x1e0   : > { %v838_v55 = vpop.xlane.xlu0 (%p719_p11), %837 }
 0x1e1   : > { %v839_v56 = vmul.f32 (%p719_p11), %v838_v55, %v2626_v16 }
 0x1e3   : > { %v840_v57 = vsub.f32 (%p719_p11), %v833_v53, %v839_v56 }
 0x1e5   : > { %v841_v58 = vmul.f32 (%p719_p11), %v840_v57, %v840_v57 }
 0x1e7   : > { %v842_v59 = vsel (%p719_p11), %vm678_vm0, %v841_v58, 0.0 }
 0x1e8   : > { %843 = vadd.xlane.f32.xlu0 (%p719_p11), %v842_v59 }
 0x1f2   : >> { %v770_v47 = vpop.f32.mrf.mxu0 }
 0x1f3   : >> { %v827_v48 = vpop.f32.mrf.mxu1  ;;  %v774_v49 = vmul.f32 0.5, %v770_v47 }
 0x1f4   : >> { %v828_v50 = vadd.f32 %v2189_v46, %v827_v48 }
 0x1f5   : >> { %778 = vst.msk [vmem:[%s776_s18] sm:$0xff] %vm777_vm5, %v774_v49 }
 0x1f6   : >> { %832 = vst.msk [vmem:[%s831_s20] sm:$0xff] %vm777_vm5, %v828_v50 }
 0x1f7   : > { %721 = sbr.rel (!%p719_p11) target bundleno = 355 (0x163), region = 230 }
 0x1fa   : >> { %v772_v51 = vpop.f32.mrf.mxu0 }
 0x1fb   : >> { %v829_v52 = vpop.f32.mrf.mxu1 }
 0x25b   : > { %v844_v60 = vpop.xlane.xlu0 %843 }
 0x25c   : > { %v845_v61 = vmul.f32 %v844_v60, %v2626_v16 }
 0x25e   : > { %v846_v62 = vadd.f32 1e-05, %v845_v61 }
 0x260   : > { %2192 = vrsqrt.f32 %v846_v62  ;;  %vm853_vm7 = vweird.f32 %v846_v62 }
 0x266   : > { %v2193_v63 = vpop.eup %2192 }
 0x267   : > { %v848_v0 = vmul.f32 %v2193_v63, %v846_v62  ;;  %vm854_vm6 = vweird.f32 %v2193_v63 }
 0x268   : > { %vm855_vm8 = vmor %vm853_vm7, %vm854_vm6 }
 0x269   : > { %v849_v1 = vmul.f32 %v2193_v63, %v848_v0 }
 0x26b   : > { %v850_v2 = vmul.f32 0.5, %v849_v1 }
 0x26d   : > { %v851_v3 = vsub.f32 1.5, %v850_v2 }
 0x26f   : > { %v852_v4 = vmul.f32 %v2193_v63, %v851_v3 }
 0x271   : > { %v856_v6 = vsel %vm855_vm8, %v2193_v63, %v852_v4 }
 0x272   : > { %v857_v8 = vmul.f32 %v856_v6, %v840_v57 }
 0x274   : > { %v861_v9 = vmul.f32 %v2190_v5, %v857_v8 }
 0x276   : > { %v865_v10 = vadd.f32 %v2191_v7, %v861_v9 }
 0x278   : > { %v866_v11 = vpack.c.bf16 %v865_v10, %v865_v10 }
 0x279 LB: >> { %s2017_s16 = sshll.u32 %s2379_s12, 5  ;;  %s2908_s9 = sld [smem:[#allocation25_spill]]  ;;  %s2379_s12 = sphi %s2672_s12, %s872_s12  }
 0x27a   : >> { %s875_s30 = scalar_lea.vmem %s2857_s5, %s2017_s16  ;;  %s930_s29 = scalar_lea.vmem %s2858_s6, %s2017_s16 }
 0x27b   : >> { %v2021_v12 = vld [vmem:[%s875_s30 + $0x18] sm:$0xff]  ;;  %v2020_v14 = vld [vmem:[%s875_s30 + $0x10] sm:$0xff]  ;;  %v2019_v16 = vld [vmem:[%s875_s30 + $0x8] sm:$0xff]  ;;  %s1895_s16 = sshll.u32 %s2379_s12, 4 }
 0x27c   : >> { %v2026_v13 = vld [vmem:[%s930_s29 + $0x18] sm:$0xff]  ;;  %915 = vmatpush.bf16.msra.mxu0 %v2021_v12  ;;  %v2025_v15 = vld [vmem:[%s930_s29 + $0x10] sm:$0xff]  ;;  %v2024_v17 = vld [vmem:[%s930_s29 + $0x8] sm:$0xff]  ;;  %s926_s15 = scalar_lea.vmem [#allocation2], %s1895_s16 }
 0x27d   : >> { %972 = vmatpush.bf16.msra.mxu1 %v2026_v13  ;;  %v2018_v18 = vld [vmem:[%s875_s30] sm:$0xff]  ;;  %s981_s30 = scalar_lea.vmem [#allocation3], %s1895_s16 }
 0x27e   : >> { %v2023_v19 = vld [vmem:[%s930_s29] sm:$0xff] }
 0x27f   : >> { %s939_s25 = scalar_lea.vmem %s2908_s9, %s2379_s12  ;;  %s872_s12 = sadd.s32 1, %s2379_s12  }
 0x280   : >> { %916 = vmatpush.bf16.msra.mxu0 %v2020_v14  ;;  %v2194_v20 = vld [vmem:[%s939_s25] ss:$0 sm:$0xff]  ;;  %p869_p12 = scmp.ge.s32.totalorder %s872_s12, 4  }
 0x281   : >> { %973 = vmatpush.bf16.msra.mxu1 %v2025_v15 }
 0x284   : >> { %917 = vmatpush.bf16.msra.mxu0 %v2019_v16 }
 0x285   : >> { %974 = vmatpush.bf16.msra.mxu1 %v2024_v17 }
 0x288   : >> { %918 = vmatpush.bf16.msra.mxu0 %v2018_v18 }
 0x289   : >> { %975 = vmatpush.bf16.msra.mxu1 %v2023_v19 }
 0x28b   : >> { %1894 = vmatmul.msk.bf16.vlgmr.msra.gmra.mxu0 %vm678_vm0, %v866_v11 }
 0x28c   : >> { %1913 = vmatmul.msk.bf16.vlgmr.msra.gmra.mxu1 %vm678_vm0, %v866_v11 }
 0x308   : >> { %v920_v21 = vpop.f32.mrf.mxu0 }
 0x309   : >> { %v977_v22 = vpop.f32.mrf.mxu1  ;;  %v924_v23 = vmul.f32 0.5, %v920_v21 }
 0x30a   : >> { %v978_v24 = vadd.f32 %v2194_v20, %v977_v22 }
 0x30b   : >> { %928 = vst.msk [vmem:[%s926_s15 + $0x8] sm:$0xff] %vm777_vm5, %v924_v23 }
 0x30c   : >> { %982 = vst.msk [vmem:[%s981_s30 + $0x8] sm:$0xff] %vm777_vm5, %v978_v24 }
 0x30d   : > { %871 = sbr.rel (!%p869_p12) target bundleno = 633 (0x279), region = 241 }
 0x310   : >> { %v922_v25 = vpop.f32.mrf.mxu0 }
 0x311   : >> { %v979_v26 = vpop.f32.mrf.mxu1 }
 0x312 PF: > { %p1914_p0 = scmp.ne.s32.totalorder %s2347_s26, 0 }
 0x313   : > { %s1915_s18 = sshll.u32 (!%p1914_p0), %s2351_s27, 3  ;;  %s2381_s7 = smov (!%p1914_p0), 0  }
 0x314   : > { %985 = sbr.rel (%p1914_p0) target bundleno = 2180 (0x884), region = 147  ;;  %s987_s20 = scalar_lea.vmem (!%p1914_p0), %s2609_s24, %s1915_s18 }
 0x319   : > { %vm991_vm9 = vcmask 523264   ;;  %v2699_v27 = vld [vmem:[%s987_s20] sm:$0xff]  ;;  %v2390_v29 = vmov 64.0  }
 0x31a   : > { %v992_v28 = vsel %vm991_vm9, %v2699_v27, 0.0  ;;  %2197 = vrcp.f32 %v2390_v29  ;;  %v2195_v50 = vld [vmem:[%s2853_s1] ss:$0 sm:$0xff] }
 0x31b   : > { %993 = vadd.xlane.f32.xlu0 %v992_v28  ;;  %v2196_v52 = vld [vmem:[%s2854_s2] ss:$0 sm:$0xff] }
 0x320   : > { %v2198_v30 = vpop.eup %2197 }
 0x321   : > { %v996_v31 = vmul.f32 64.0, %v2198_v30  ;;  %vm1000_vm10 = vweird.f32 %v2198_v30 }
 0x323   : > { %v997_v32 = vsub.f32 1.0, %v996_v31 }
 0x325   : > { %v998_v33 = vmul.f32 %v2198_v30, %v997_v32 }
 0x327   : > { %v999_v34 = vadd.f32 %v2198_v30, %v998_v33 }
 0x329   : > { %v2703_v35 = vsel %vm1000_vm10, %v2198_v30, %v999_v34 }
 0x38e   : > { %v994_v36 = vpop.xlane.xlu0 %993 }
 0x38f   : > { %v1002_v37 = vmul.f32 %v2703_v35, %v994_v36 }
 0x391   : > { %v1003_v38 = vsub.f32 %v2699_v27, %v1002_v37 }
 0x393   : > { %v1004_v39 = vmul.f32 %v1003_v38, %v1003_v38 }
 0x395   : > { %v1005_v40 = vsel %vm991_vm9, %v1004_v39, 0.0 }
 0x396   : > { %1006 = vadd.xlane.f32.xlu0 %v1005_v40 }
 0x409   : > { %v1007_v41 = vpop.xlane.xlu0 %1006 }
 0x40a   : > { %v1008_v42 = vmul.f32 %v1007_v41, %v2703_v35 }
 0x40c   : > { %v1009_v43 = vadd.f32 1e-05, %v1008_v42 }
 0x40e   : > { %2199 = vrsqrt.f32 %v1009_v43  ;;  %vm1016_vm12 = vweird.f32 %v1009_v43 }
 0x414   : > { %v2200_v44 = vpop.eup %2199 }
 0x415   : > { %v1011_v45 = vmul.f32 %v2200_v44, %v1009_v43  ;;  %vm1017_vm11 = vweird.f32 %v2200_v44 }
 0x416   : > { %vm1018_vm13 = vmor %vm1016_vm12, %vm1017_vm11 }
 0x417   : > { %v1012_v46 = vmul.f32 %v2200_v44, %v1011_v45 }
 0x419   : > { %v1013_v47 = vmul.f32 0.5, %v1012_v46 }
 0x41b   : > { %v1014_v48 = vsub.f32 1.5, %v1013_v47 }
 0x41d   : > { %v1015_v49 = vmul.f32 %v2200_v44, %v1014_v48 }
 0x41f   : > { %v1019_v51 = vsel %vm1018_vm13, %v2200_v44, %v1015_v49 }
 0x420   : > { %v1020_v53 = vmul.f32 %v1019_v51, %v1003_v38 }
 0x422   : > { %v1024_v54 = vmul.f32 %v2195_v50, %v1020_v53 }
 0x424   : > { %v1028_v55 = vadd.f32 %v2196_v52, %v1024_v54 }
 0x426   : > { %v1029_v56 = vpack.c.bf16 %v1028_v55, %v1028_v55 }
 0x427 LB: >> { %s2027_s9 = sshll.u32 %s2383_s7, 5  ;;  %s2909_s15 = sld [smem:[#allocation23_spill]]  ;;  %vm1094_vm14 = vcmask 130048   ;;  %s2383_s7 = sphi %s2381_s7, %s1035_s7  }
 0x428   : >> { %s2910_s24 = sld [smem:[#allocation24_spill]]  ;;  %s1916_s29 = sshll.u32 %s2383_s7, 3 }
 0x429   : >> { %s1093_s3 = scalar_lea.vmem [#allocation4], %s1916_s29 }
 0x42d   : >> { %s1038_s30 = scalar_lea.vmem %s2909_s15, %s2027_s9 }
 0x42e   : >> { %v2031_v57 = vld [vmem:[%s1038_s30 + $0x18] sm:$0xff]  ;;  %s1047_s12 = scalar_lea.vmem %s2910_s24, %s2383_s7  ;;  %v2030_v58 = vld [vmem:[%s1038_s30 + $0x10] sm:$0xff]  ;;  %v2029_v59 = vld [vmem:[%s1038_s30 + $0x8] sm:$0xff]  ;;  %s1035_s7 = sadd.s32 1, %s2383_s7  }
 0x42f   : >> { %1083 = vmatpush.bf16.msra.mxu0 %v2031_v57  ;;  %v2028_v60 = vld [vmem:[%s1038_s30] sm:$0xff]  ;;  %p1032_p1 = scmp.ge.s32.totalorder %s1035_s7, 4  }
 0x430   : >> { %v2201_v61 = vld [vmem:[%s1047_s12] ss:$0 sm:$0xff]  ;;  %v1105_v3 = vld [vmem:[#allocation2 + $0x8] sm:$0xff] (%p1032_p1)  ;;  %v1110_v9 = vld [vmem:[#allocation2 + $0x30] sm:$0xff] (%p1032_p1)  ;;  %s2911_s25 = sld [smem:[#allocation27_spill]] (%p1032_p1)  ;;  %s2385_s16 = smov (%p1032_p1), 0  }
 0x431   : > { %v1104_v2 = vld [vmem:[#allocation2] sm:$0xff] (%p1032_p1)  ;;  %v1113_v6 = vpack.c.bf16 (%p1032_p1), %v1105_v3, %v1105_v3  ;;  %v1109_v7 = vld [vmem:[#allocation2 + $0x28] sm:$0xff] (%p1032_p1)  ;;  %v1111_v10 = vld [vmem:[#allocation2 + $0x38] sm:$0xff] (%p1032_p1)  ;;  %v1118_v12 = vpack.c.bf16 (%p1032_p1), %v1110_v9, %v1110_v9 }
 0x432   : > { %v1108_v4 = vld [vmem:[#allocation2 + $0x20] sm:$0xff] (%p1032_p1)  ;;  %v1112_v5 = vpack.c.bf16 (%p1032_p1), %v1104_v2, %v1104_v2  ;;  %v1117_v11 = vpack.c.bf16 (%p1032_p1), %v1109_v7, %v1109_v7  ;;  %v1119_v13 = vpack.c.bf16 (%p1032_p1), %v1111_v10, %v1111_v10  ;;  %v1106_v17 = vld [vmem:[#allocation2 + $0x10] sm:$0xff] (%p1032_p1)  ;;  %v1107_v18 = vld [vmem:[#allocation2 + $0x18] sm:$0xff] (%p1032_p1) }
 0x433   : >> { %1084 = vmatpush.bf16.msra.mxu0 %v2030_v58  ;;  %v1116_v8 = vpack.c.bf16 (%p1032_p1), %v1108_v4, %v1108_v4  ;;  %v1123_v15 = vunpack.c.l.b16 (%p1032_p1), %v1113_v6  ;;  %v1195_v20 = vunpack.c.l.b16 (%p1032_p1), %v1118_v12  ;;  %v1114_v23 = vpack.c.bf16 (%p1032_p1), %v1106_v17, %v1106_v17  ;;  %v1265_v12 = vld [vmem:[#allocation3] sm:$0xff] (%p1032_p1) }
 0x434   : > { %v1122_v14 = vunpack.c.l.b16 (%p1032_p1), %v1112_v5  ;;  %v1172_v19 = vunpack.c.l.b16 (%p1032_p1), %v1117_v11  ;;  %v1196_v21 = vunpack.c.l.b16 (%p1032_p1), %v1119_v13  ;;  %v1115_v24 = vpack.c.bf16 (%p1032_p1), %v1107_v18, %v1107_v18  ;;  %v1266_v13 = vld [vmem:[#allocation3 + $0x8] sm:$0xff] (%p1032_p1) }
 0x435   : > { %v1171_v16 = vunpack.c.l.b16 (%p1032_p1), %v1116_v8  ;;  %v1147_v29 = vunpack.c.l.b16 (%p1032_p1), %v1114_v23 }
 0x436   : > { %v1124_v22 = vpack.c.b16 (%p1032_p1), %v1123_v15, %v1122_v14  ;;  %v1197_v26 = vpack.c.b16 (%p1032_p1), %v1196_v21, %v1195_v20  ;;  %v1148_v30 = vunpack.c.l.b16 (%p1032_p1), %v1115_v24  ;;  %v1273_v14 = vpack.c.bf16 (%p1032_p1), %v1265_v12, %v1265_v12  ;;  %v1270_v20 = vld [vmem:[#allocation3 + $0x28] sm:$0xff] (%p1032_p1)  ;;  %v1271_v21 = vld [vmem:[#allocation3 + $0x30] sm:$0xff] (%p1032_p1)  ;;  %v1272_v24 = vld [vmem:[#allocation3 + $0x38] sm:$0xff] (%p1032_p1) }
 0x437   : >> { %1085 = vmatpush.bf16.msra.mxu0 %v2029_v59  ;;  %v1173_v25 = vpack.c.b16 (%p1032_p1), %v1172_v19, %v1171_v16  ;;  %v1274_v15 = vpack.c.bf16 (%p1032_p1), %v1266_v13, %v1266_v13  ;;  %v1269_v19 = vld [vmem:[#allocation3 + $0x20] sm:$0xff] (%p1032_p1)  ;;  %v1278_v23 = vpack.c.bf16 (%p1032_p1), %v1270_v20, %v1270_v20 }
 0x438   : > { %v1130_v28 = vsel (%p1032_p1), %vm1094_vm14, %v1124_v22, 0  ;;  %v1202_v32 = vsel (%p1032_p1), %vm1094_vm14, %v1197_v26, 0  ;;  %v1149_v37 = vpack.c.b16 (%p1032_p1), %v1148_v30, %v1147_v29  ;;  %v1283_v16 = vunpack.c.l.b16 (%p1032_p1), %v1273_v14  ;;  %v1268_v29 = vld [vmem:[#allocation3 + $0x18] sm:$0xff] (%p1032_p1) }
 0x439   : > { %v1178_v31 = vsel (%p1032_p1), %vm1094_vm14, %v1173_v25, 0  ;;  %1211 = vmatpush.bf16.xpose.msra.mxu3 (%p1032_p1), %v1202_v32  ;;  %v1284_v17 = vunpack.c.l.b16 (%p1032_p1), %v1274_v15  ;;  %v1277_v22 = vpack.c.bf16 (%p1032_p1), %v1269_v19, %v1269_v19  ;;  %v1279_v25 = vpack.c.bf16 (%p1032_p1), %v1271_v21, %v1271_v21 }
 0x43a   : > { %1187 = vmatpush.bf16.xpose.msra.mxu2 (%p1032_p1), %v1178_v31  ;;  %v1154_v39 = vsel (%p1032_p1), %vm1094_vm14, %v1149_v37, 0  ;;  %v1280_v26 = vpack.c.bf16 (%p1032_p1), %v1272_v24, %v1272_v24  ;;  %v1328_v31 = vunpack.c.l.b16 (%p1032_p1), %v1278_v23 }
 0x43b   : >> { %1086 = vmatpush.bf16.msra.mxu0 %v2028_v60  ;;  %1163 = vmatpush.bf16.xpose.msra.mxu1 (%p1032_p1), %v1154_v39  ;;  %v1285_v18 = vpack.c.b16 (%p1032_p1), %v1284_v17, %v1283_v16  ;;  %v1327_v30 = vunpack.c.l.b16 (%p1032_p1), %v1277_v22  ;;  %v1349_v32 = vunpack.c.l.b16 (%p1032_p1), %v1279_v25 }
 0x43d   : > { %v1329_v37 = vpack.c.b16 (%p1032_p1), %v1328_v31, %v1327_v30 }
 0x43e   : >> { %1934 = vmatmul.msk.bf16.vlgmr.msra.gmra.mxu0 %vm991_vm9, %v1029_v56 }
 0x43f   : > { %1139 = vmatpush.bf16.xpose.msra.mxu0 (%p1032_p1), %v1130_v28  ;;  %v1267_v28 = vld [vmem:[#allocation3 + $0x10] sm:$0xff] (%p1032_p1) }
 0x442   : > { %1341 = vmatpush.bf16.msrb.mxu2 (%p1032_p1), %v1329_v37 }
 0x447   : > { %1297 = vmatpush.bf16.msrb.mxu0 (%p1032_p1), %v1285_v18 }
 0x4bb   : >> { %v1088_v62 = vpop.f32.mrf.mxu0 }
 0x4bc   : >> { %v1089_v63 = vadd.f32 %v2201_v61, %v1088_v62 }
 0x4be   : >> { %v1092_v0 = vmul.f32 0.5, %v1089_v63 }
 0x4bf   : > { %1034 = sbr.rel (!%p1032_p1) target bundleno = 1063 (0x427), region = 252 }
 0x4c0   : >> { %1095 = vst.msk [vmem:[%s1093_s3] sm:$0xff] %vm1094_vm14, %v1092_v0 }
 0x4c3   : >> { %v1090_v1 = vpop.f32.mrf.mxu0 }
 0x4c7   : > { %v1096_v33 = vld [vmem:[#allocation4] sm:$0xff]  ;;  %v1098_v34 = vld [vmem:[#allocation4 + $0x10] sm:$0xff]  ;;  %v1099_v36 = vld [vmem:[#allocation4 + $0x18] sm:$0xff] }
 0x4c8   : > { %v1100_v38 = vpack.c.bf16 %v1096_v33, %v1096_v33  ;;  %v1102_v40 = vpack.c.bf16 %v1098_v34, %v1098_v34  ;;  %v1103_v41 = vpack.c.bf16 %v1099_v36, %v1099_v36  ;;  %v1097_v42 = vld [vmem:[#allocation4 + $0x8] sm:$0xff]  ;;  %v1275_v33 = vpack.c.bf16 %v1267_v28, %v1267_v28 }
 0x4c9   : > { %v1101_v43 = vpack.c.bf16 %v1097_v42, %v1097_v42  ;;  %v1350_v34 = vunpack.c.l.b16 %v1280_v26  ;;  %v1276_v36 = vpack.c.bf16 %v1268_v29, %v1268_v29 }
 0x4ca   : > { %1935 = vmatmul.msk.bf16.vlgmr.msra.gmra.mxu0 %vm1094_vm14, %v1100_v38  ;;  %1937 = vmatmul.msk.bf16.vlgmr.msra.gmra.mxu2 %vm1094_vm14, %v1102_v40  ;;  %v1305_v38 = vunpack.c.l.b16 %v1275_v33 }
 0x4cb   : > { %1938 = vmatmul.msk.bf16.vlgmr.msra.gmra.mxu3 %vm1094_vm14, %v1103_v41  ;;  %1936 = vmatmul.msk.bf16.vlgmr.msra.gmra.mxu1 %vm1094_vm14, %v1101_v43  ;;  %v1351_v39 = vpack.c.b16 %v1350_v34, %v1349_v32  ;;  %v1306_v40 = vunpack.c.l.b16 %v1276_v36 }
 0x4cd   : > { %1363 = vmatpush.bf16.msrb.mxu3 %v1351_v39  ;;  %v1307_v41 = vpack.c.b16 %v1306_v40, %v1305_v38 }
 0x4cf   : > { %1319 = vmatpush.bf16.msrb.mxu1 %v1307_v41 }
 0x547   : > { %v1141_v44 = vpop.f32.mrf.mxu0 }
 0x548   : > { %v1217_v45 = vsel %vm1094_vm14, %v1141_v44, -inf  ;;  %v1165_v46 = vpop.f32.mrf.mxu1 }
 0x549   : > { %1218 = vmax.xlane.f32.xlu1 %v1217_v45  ;;  %v1220_v49 = vsel %vm1094_vm14, %v1165_v46, -inf }
 0x54d   : > { %v1189_v47 = vpop.f32.mrf.mxu2 }
 0x54e   : > { %v1213_v48 = vpop.f32.mrf.mxu3  ;;  %v1223_v50 = vsel %vm1094_vm14, %v1189_v47, -inf }
 0x54f   : > { %v1143_v51 = vpop.f32.mrf.mxu0  ;;  %1224 = vmax.xlane.f32.xlu0 %v1223_v50  ;;  %v1226_v53 = vsel %vm1094_vm14, %v1213_v48, -inf }
 0x550   : > { %v1167_v52 = vpop.f32.mrf.mxu1 }
 0x551   : > { %1221 = vmax.xlane.f32.xlu1 %v1220_v49 }
 0x555   : > { %v1191_v54 = vpop.f32.mrf.mxu2 }
 0x556   : > { %v1215_v55 = vpop.f32.mrf.mxu3 }
 0x557   : > { %1227 = vmax.xlane.f32.xlu0 %v1226_v53 }
 0x5bc   : > { %v1219_v56 = vpop.xlane.xlu1 %1218 }
 0x5bd   : > { %v1229_v57 = vsub.f32 %v1141_v44, %v1219_v56 }
 0x5bf   : > { %v1233_v58 = vmul.f32 1.442695, %v1229_v57 }
 0x5c1   : > { %2203 = vpow2.f32 %v1233_v58  ;;  %v2202_v58 = vld [vmem:[%s2911_s25] ss:$0 sm:$0xff] }
 0x5c2   : > { %v1225_v59 = vpop.xlane.xlu0 %1224 }
 0x5c3   : > { %v1231_v60 = vsub.f32 %v1189_v47, %v1225_v59  ;;  %v1377_v59 = vadd.f32 %v2202_v58, %v2699_v27 }
 0x5c4   : > { %v1222_v61 = vpop.xlane.xlu1 %1221 }
 0x5c5   : > { %v1230_v62 = vsub.f32 %v1165_v46, %v1222_v61  ;;  %v1237_v63 = vmul.f32 1.442695, %v1231_v60  ;;  %1378 = vst.msk [vmem:[#allocation6] sm:$0xff] %vm991_vm9, %v1377_v59 }
 0x5c7   : > { %v2204_v0 = vpop.eup %2203  ;;  %v1235_v1 = vmul.f32 1.442695, %v1230_v62  ;;  %2205 = vpow2.f32 %v1237_v63 }
 0x5c8   : > { %v1241_v2 = vsel %vm1094_vm14, %v2204_v0, 0.0 }
 0x5c9   : > { %2207 = vpow2.f32 %v1235_v1  ;;  %1242 = vadd.xlane.f32.xlu0 %v1241_v2 }
 0x5ca   : > { %v1228_v3 = vpop.xlane.xlu0 %1227 }
 0x5cb   : > { %v1232_v4 = vsub.f32 %v1213_v48, %v1228_v3 }
 0x5cd   : > { %v2206_v5 = vpop.eup %2205  ;;  %v1239_v6 = vmul.f32 1.442695, %v1232_v4 }
 0x5ce   : > { %v1247_v8 = vsel %vm1094_vm14, %v2206_v5, 0.0 }
 0x5cf   : > { %v2208_v7 = vpop.eup %2207  ;;  %2209 = vpow2.f32 %v1239_v6  ;;  %1248 = vadd.xlane.f32.xlu2 %v1247_v8 }
 0x5d0   : > { %v1244_v9 = vsel %vm1094_vm14, %v2208_v7, 0.0 }
 0x5d1   : > { %1245 = vadd.xlane.f32.xlu1 %v1244_v9 }
 0x5d5   : > { %v2210_v10 = vpop.eup %2209 }
 0x5d6   : > { %v1250_v11 = vsel %vm1094_vm14, %v2210_v10, 0.0 }
 0x5d7   : > { %1251 = vadd.xlane.f32.xlu2 %v1250_v11 }
 0x63c   : > { %v1243_v42 = vpop.xlane.xlu0 %1242 }
 0x63d   : > { %2211 = vrcp.f32 %v1243_v42 }
 0x642   : > { %v1249_v44 = vpop.xlane.xlu2 %1248 }
 0x643   : > { %v2212_v43 = vpop.eup %2211  ;;  %2213 = vrcp.f32 %v1249_v44 }
 0x644   : > { %v1246_v45 = vpop.xlane.xlu1 %1245  ;;  %v1257_v46 = vmul.f32 %v2212_v43, %v2204_v0 }
 0x645   : > { %2215 = vrcp.f32 %v1246_v45 }
 0x646   : > { %v1261_v47 = vpack.c.bf16 %v1257_v46, %v1257_v46 }
 0x648   : > { %1939 = vmatmul.msk.bf16.vlgmr.msrb.gmra.mxu0 %vm1094_vm14, %v1261_v47 }
 0x649   : > { %v2214_v48 = vpop.eup %2213 }
 0x64a   : > { %v1252_v50 = vpop.xlane.xlu2 %1251  ;;  %v1259_v51 = vmul.f32 %v2214_v48, %v2206_v5 }
 0x64b   : > { %v2216_v49 = vpop.eup %2215  ;;  %2217 = vrcp.f32 %v1252_v50 }
 0x64c   : > { %v1258_v52 = vmul.f32 %v2216_v49, %v2208_v7  ;;  %v1263_v53 = vpack.c.bf16 %v1259_v51, %v1259_v51 }
 0x64e   : > { %v1262_v54 = vpack.c.bf16 %v1258_v52, %v1258_v52  ;;  %1941 = vmatmul.msk.bf16.vlgmr.msrb.gmra.mxu2 %vm1094_vm14, %v1263_v53 }
 0x650   : > { %1940 = vmatmul.msk.bf16.vlgmr.msrb.gmra.mxu1 %vm1094_vm14, %v1262_v54 }
 0x651   : > { %v2218_v55 = vpop.eup %2217 }
 0x652   : > { %v1260_v56 = vmul.f32 %v2218_v55, %v2210_v10 }
 0x654   : > { %v1264_v57 = vpack.c.bf16 %v1260_v56, %v1260_v56 }
 0x656   : > { %1942 = vmatmul.msk.bf16.vlgmr.msrb.gmra.mxu3 %vm1094_vm14, %v1264_v57 }
 0x6c5   : > { %v1299_v60 = vpop.f32.mrf.mxu0 }
 0x6c6   : > { %1369 = vst.msk [vmem:[#allocation4] sm:$0xff] %vm1094_vm14, %v1299_v60 }
 0x6cd   : > { %v1301_v61 = vpop.f32.mrf.mxu0  ;;  %v1321_v62 = vpop.f32.mrf.mxu1 }
 0x6ce   : > { %1370 = vst.msk [vmem:[#allocation4 + $0x8] sm:$0xff] %vm1094_vm14, %v1321_v62 }
 0x6d1   : > { %v1343_v63 = vpop.f32.mrf.mxu2 }
 0x6d2   : > { %1371 = vst.msk [vmem:[#allocation4 + $0x10] sm:$0xff] %vm1094_vm14, %v1343_v63 }
 0x6d5   : > { %v1323_v0 = vpop.f32.mrf.mxu1 }
 0x6d9   : > { %v1345_v1 = vpop.f32.mrf.mxu2  ;;  %v1365_v2 = vpop.f32.mrf.mxu3 }
 0x6da   : > { %1372 = vst.msk [vmem:[#allocation4 + $0x18] sm:$0xff] %vm1094_vm14, %v1365_v2 }
 0x6e1   : > { %v1367_v3 = vpop.f32.mrf.mxu3 }
 0x6e2 LB: >> { %s1943_s15 = sshll.u32 %s2387_s16, 3  ;;  %s2912_s20 = sld [smem:[#allocation26_spill]]  ;;  %v1385_v6 = vld [vmem:[#allocation6] sm:$0xff]  ;;  %s2387_s16 = sphi %s2385_s16, %s1384_s16  }
 0x6e3   : >> { %s1387_s12 = scalar_lea.vmem [#allocation4], %s1943_s15  ;;  %s1384_s16 = sadd.s32 1, %s2387_s16  }
 0x6e4   : >> { %v1388_v4 = vld [vmem:[%s1387_s12] sm:$0xff]  ;;  %p1381_p2 = scmp.ge.s32.totalorder %s1384_s16, 4  }
 0x6e5   : >> { %v1389_v5 = vpack.c.bf16 %v1388_v4, %v1388_v4  ;;  %s2913_s7 = sld [smem:[#allocation28_spill]] (%p1381_p2)  ;;  %vm1453_vm2 = vcmask (%p1381_p2), 519168  }
 0x6e6   : > { %s2914_s16 = sld [smem:[#allocation29_spill]] (%p1381_p2) }
 0x6e8   : >> { %s1392_s24 = scalar_lea.vmem %s2912_s20, %s1943_s15 }
 0x6e9   : >> { %v2033_v27 = vld [vmem:[%s1392_s24] sm:$0xff] }
 0x6ea   : >> { %1411 = vmatpush.bf16.msra.mxu0 %v2033_v27 }
 0x6eb   : > { %v2219_v26 = vld [vmem:[%s2913_s7] ss:$0 sm:$0xff] (%p1381_p2) }
 0x6ed   : >> { %1950 = vmatmul.msk.bf16.vlgmr.msra.gmra.mxu0 %vm1094_vm14, %v1389_v5 }
 0x76a   : >> { %v1413_v7 = vpop.f32.mrf.mxu0 }
 0x76b   : >> { %v1417_v8 = vadd.f32 %v1413_v7, %v1385_v6 }
 0x76d   : >> { %1418 = vst.msk [vmem:[#allocation6] sm:$0xff] %vm991_vm9, %v1417_v8 }
 0x772   : >> { %v1415_v9 = vpop.f32.mrf.mxu0  ;;  %1383 = sbr.rel (!%p1381_p2) target bundleno = 1762 (0x6e2), region = 263 }
 0x774   : > { %v1419_v10 = vld [vmem:[#allocation6] sm:$0xff] (%p1381_p2) }
 0x775   : > { %v1422_v11 = vsel (%p1381_p2), %vm991_vm9, %v1419_v10, 0.0 }
 0x776   : > { %1423 = vadd.xlane.f32.xlu0 (%p1381_p2), %v1422_v11 }
 0x7e9   : > { %v1424_v12 = vpop.xlane.xlu0 %1423 }
 0x7ea   : > { %v1425_v13 = vmul.f32 %v1424_v12, %v2703_v35 }
 0x7ec   : > { %v1426_v14 = vsub.f32 %v1419_v10, %v1425_v13 }
 0x7ee   : > { %v1427_v15 = vmul.f32 %v1426_v14, %v1426_v14 }
 0x7f0   : > { %v1428_v16 = vsel %vm991_vm9, %v1427_v15, 0.0 }
 0x7f1   : > { %1429 = vadd.xlane.f32.xlu0 %v1428_v16 }
 0x864   : > { %v1430_v17 = vpop.xlane.xlu0 %1429 }
 0x865   : > { %v1431_v18 = vmul.f32 %v1430_v17, %v2703_v35  ;;  %v2220_v35 = vld [vmem:[%s2914_s16] ss:$0 sm:$0xff] }
 0x867   : > { %v1432_v19 = vadd.f32 1e-05, %v1431_v18 }
 0x869   : > { %2221 = vrsqrt.f32 %v1432_v19  ;;  %vm1439_vm0 = vweird.f32 %v1432_v19 }
 0x86f   : > { %v2222_v20 = vpop.eup %2221 }
 0x870   : > { %v1434_v21 = vmul.f32 %v2222_v20, %v1432_v19  ;;  %vm1440_vm15 = vweird.f32 %v2222_v20 }
 0x871   : > { %vm1441_vm1 = vmor %vm1439_vm0, %vm1440_vm15 }
 0x872   : > { %v1435_v22 = vmul.f32 %v2222_v20, %v1434_v21 }
 0x874   : > { %v1436_v23 = vmul.f32 0.5, %v1435_v22 }
 0x876   : > { %v1437_v24 = vsub.f32 1.5, %v1436_v23 }
 0x878   : > { %v1438_v25 = vmul.f32 %v2222_v20, %v1437_v24 }
 0x87a   : > { %v1442_v28 = vsel %vm1441_vm1, %v2222_v20, %v1438_v25 }
 0x87b   : > { %v1443_v29 = vmul.f32 %v1442_v28, %v1426_v14 }
 0x87d   : > { %v1447_v30 = vmul.f32 %v2219_v26, %v1443_v29 }
 0x87f   : > { %v1451_v31 = vadd.f32 %v2220_v35, %v1447_v30 }
 0x881   : > { %v1452_v32 = vpack.c.bf16 %v1451_v31, %v1451_v31 }
 0x883   : > { %1454 = vst.msk [vmem:[#allocation5] sm:$0xf] %vm1453_vm2, %v1452_v32 }
 0x884 PF: > { %v2037_v33 = vld [vmem:[%s2621_s19 + $0x18] sm:$0xff]  ;;  %v2036_v34 = vld [vmem:[%s2621_s19 + $0x10] sm:$0xff]  ;;  %v2035_v36 = vld [vmem:[%s2621_s19 + $0x8] sm:$0xff]  ;;  %vm1492_vm3 = vcmask 523264   ;;  %p2000_p3 = scmp.ne.s32.totalorder %s2347_s26, 1 }
 0x885   : > { %1500 = vmatpush.bf16.msra.mxu0 %v2037_v33  ;;  %v2034_v37 = vld [vmem:[%s2621_s19] sm:$0xff]  ;;  %v2045_v39 = vld [vmem:[%s2619_s23 + $0x38] sm:$0xff]  ;;  %v2223_v42 = vld [vmem:[%s661_s8] ss:$0 sm:$0xff]  ;;  %s2915_s4 = sld [smem:[#allocation31_spill]] (!%p2000_p3) }
 0x886   : > { %1615 = vmatpush.bf16.msra.mxu1 %v2045_v39  ;;  %v2044_v40 = vld [vmem:[%s2619_s23 + $0x30] sm:$0xff]  ;;  %v2043_v41 = vld [vmem:[%s2619_s23 + $0x28] sm:$0xff]  ;;  %v2042_v44 = vld [vmem:[%s2619_s23 + $0x20] sm:$0xff] }
 0x887   : > { %v2041_v47 = vld [vmem:[%s2619_s23 + $0x18] sm:$0xff]  ;;  %v2040_v51 = vld [vmem:[%s2619_s23 + $0x10] sm:$0xff]  ;;  %v2039_v53 = vld [vmem:[%s2619_s23 + $0x8] sm:$0xff] }
 0x888   : > { %v2038_v54 = vld [vmem:[%s2619_s23] sm:$0xff] }
 0x889   : > { %1501 = vmatpush.bf16.msra.mxu0 %v2036_v34  ;;  %v1550_v21 = vld [vmem:[#allocation6] sm:$0xff] }
 0x88a   : > { %v1455_v38 = vld [vmem:[#allocation5] sm:$0xf]  ;;  %1616 = vmatpush.bf16.msra.mxu1 %v2044_v40 }
 0x88d   : > { %1502 = vmatpush.bf16.msra.mxu0 %v2035_v36 }
 0x88e   : > { %1617 = vmatpush.bf16.msra.mxu1 %v2043_v41 }
 0x891   : > { %1503 = vmatpush.bf16.msra.mxu0 %v2034_v37 }
 0x892   : > { %1618 = vmatpush.bf16.msra.mxu1 %v2042_v44 }
 0x894   : > { %1967 = vmatmul.msk.bf16.vlgmr.msra.gmra.mxu0 %vm1492_vm3, %v1455_v38 }
 0x896   : > { %1619 = vmatpush.bf16.msra.mxu1 %v2041_v47 }
 0x89a   : > { %1620 = vmatpush.bf16.msra.mxu1 %v2040_v51 }
 0x89e   : > { %1621 = vmatpush.bf16.msra.mxu1 %v2039_v53 }
 0x8a2   : > { %1622 = vmatpush.bf16.msra.mxu1 %v2038_v54 }
 0x911   : > { %v1505_v43 = vpop.f32.mrf.mxu0 }
 0x912   : > { %v1506_v45 = vadd.f32 %v2223_v42, %v1505_v43 }
 0x914   : > { %v1510_v46 = vmul.f32 0.70710677, %v1506_v45  ;;  %v1509_v17 = vmul.f32 0.5, %v1506_v45 }
 0x916   : > { %v1511_v48 = vand.u32 2147483647, %v1510_v46  ;;  %vm1544_vm8 = vcmp.ge.f32.partialorder %v1510_v46, 0.0 }
 0x918   : > { %v1512_v49 = vmul.f32 0.3275911, %v1511_v48  ;;  %v1538_v0 = vsub.f32 0.0, %v1511_v48 }
 0x919   : > { %v1507_v50 = vpop.f32.mrf.mxu0 }
 0x91a   : > { %v1513_v52 = vadd.f32 1.0, %v1512_v49  ;;  %v1539_v27 = vmul.f32 %v1538_v0, %v1511_v48 }
 0x91c   : > { %2224 = vrcp.f32 %v1513_v52  ;;  %v1525_v58 = vand.u32 2147483648, %v1513_v52  ;;  %v1523_v60 = vand.u32 2147483647, %v1513_v52  ;;  %vm1519_vm5 = vweird.f32 %v1513_v52 }
 0x91d   : > { %v1540_v6 = vmul.f32 1.442695, %v1539_v27 }
 0x91e   : > { %v1526_v62 = vor.u32 1.1754944e-38, %v1525_v58  ;;  %vm1524_vm7 = vcmp.eq.f32.partialorder %v1523_v60, 8.507059e+37 }
 0x91f   : > { %2226 = vpow2.f32 %v1540_v6 }
 0x922   : > { %v2225_v55 = vpop.eup %2224 }
 0x923   : > { %v1515_v56 = vmul.f32 %v2225_v55, %v1513_v52  ;;  %vm1520_vm4 = vweird.f32 %v2225_v55 }
 0x924   : > { %vm1521_vm6 = vmor %vm1519_vm5, %vm1520_vm4 }
 0x925   : > { %v1516_v57 = vsub.f32 1.0, %v1515_v56  ;;  %v2227_v12 = vpop.eup %2226 }
 0x927   : > { %v1517_v59 = vmul.f32 %v2225_v55, %v1516_v57 }
 0x929   : > { %v1518_v61 = vadd.f32 %v2225_v55, %v1517_v59 }
 0x92b   : > { %v1522_v63 = vsel %vm1521_vm6, %v2225_v55, %v1518_v61 }
 0x92c   : > { %v1527_v1 = vsel %vm1524_vm7, %v1526_v62, %v1522_v63 }
 0x92d   : > { %v1529_v2 = vmul.f32 1.0614054, %v1527_v1 }
 0x92f   : > { %v1530_v3 = vadd.f32 -1.4531521, %v1529_v2 }
 0x931   : > { %v1531_v4 = vmul.f32 %v1530_v3, %v1527_v1 }
 0x933   : > { %v1532_v5 = vadd.f32 1.4214138, %v1531_v4 }
 0x935   : > { %v1533_v7 = vmul.f32 %v1532_v5, %v1527_v1 }
 0x937   : > { %v1534_v8 = vadd.f32 -0.28449672, %v1533_v7 }
 0x939   : > { %v1535_v9 = vmul.f32 %v1534_v8, %v1527_v1 }
 0x93b   : > { %v1536_v10 = vadd.f32 0.2548296, %v1535_v9 }
 0x93d   : > { %v1537_v11 = vmul.f32 %v1536_v10, %v1527_v1 }
 0x93f   : > { %v1542_v13 = vmul.f32 %v2227_v12, %v1537_v11 }
 0x941   : > { %v1543_v14 = vsub.f32 1.0, %v1542_v13 }
 0x943   : > { %v1545_v15 = vsub.f32 0.0, %v1543_v14 }
 0x945   : > { %v1546_v16 = vsel %vm1544_vm8, %v1543_v14, %v1545_v15 }
 0x946   : > { %v1547_v18 = vadd.f32 1.0, %v1546_v16 }
 0x948   : > { %v1548_v19 = vmul.f32 %v1547_v18, %v1509_v17 }
 0x94a   : > { %v1549_v20 = vpack.c.bf16 %v1548_v19, %v1548_v19 }
 0x94c   : > { %1623 = vmatmul.bf16.vlgmr.msra.gmra.mxu1 %v1549_v20 }
 0x9c9   : > { %v1624_v22 = vpop.f32.mrf.mxu1 }
 0x9ca   : > { %v1628_v23 = vadd.f32 %v1624_v22, %v1550_v21 }
 0x9cc   : > { %1629 = vst.msk [vmem:[#allocation6] sm:$0xff] %vm1492_vm3, %v1628_v23 }
 0x9cd   : > { %1633 = sbr.rel (%p2000_p3) target bundleno = 2519 (0x9d7), region = 165 }
 0x9d1   : > { %v1626_v24 = vpop.f32.mrf.mxu1 }
 0x9d2   : > { %v2228_v26 = vld [vmem:[%s2915_s4] ss:$0 sm:$0xff] }
 0x9d3   : > { %v1634_v25 = vld [vmem:[#allocation6] sm:$0xff] }
 0x9d4   : > { %v1639_v28 = vadd.f32 %v2228_v26, %v1634_v25 }
 0x9d6   : > { %1640 = vst.msk [vmem:[%s653_s10] sm:$0xff] %vm1492_vm3, %v1639_v28 }
 0x9d7 PF: > { %s2002_s19 = sshll.u32 %s2355_s28, 1  ;;  %s1656_s26 = sshll.u32 %s653_s10, 4  ;;  %s1657_s26 = int_to_ptr.vmem [resolvable:$true] %s1656_s26 }
 0x9d8   : > { %s1652_s18 = sadd.s32 %s2351_s27, %s2002_s19  ;;  %s2916_s29 = sld [smem:[#allocation32_spill]] }
 0x9d9   : > { %s2003_s20 = sshll.u32 %s1652_s18, 3  ;;  %s2918_s25 = sand.u32 1, %s2331_s22  }
 0x9da   : > { %s1642_s16 = scalar_lea.sflag [#allocation9], %s2918_s25 }
 0x9de   : > { %s2917_s3 = smov %s2916_s29  ;;  %s1654_s7 = scalar_lea.hbm %s2916_s29, %s2003_s20 }
 0x9df   : > { %s1658_s9 = sshll.u32 %s1654_s7, 4  ;;  %s2249_s10 = scalar_lea.hbm %s2917_s3, 32  ;;  %s1659_s9 = int_to_ptr.hbm [resolvable:$true] %s1658_s9 }
 0x9e0   : > { %s2243_s15 = sshra.s32 %s1659_s9, 4  ;;  %s2244_s15 = int_to_ptr.hbm [resolvable:$true] %s2243_s15 }
 0x9e1   : > { %s2245_s30 = scalar_lea.hbm %s2244_s15, 8  ;;  %p2250_p7 = scmp.lt.s32.totalorder %s2244_s15, %s2917_s3 }
 0x9e2   : > { %p2246_p4 = scmp.ne.s32.totalorder %s2244_s15, %s2245_s30  ;;  %p2251_p8 = scmp.lt.s32.totalorder %s2249_s10, %s2245_s30 }
 0x9e4   : > { %p2247_p5 = pnand %p2246_p4, %p2566_p9  ;;  %p2252_p10 = por %p2251_p8, %p2250_p7 }
 0x9e6   : > { %p2248_p6 = pneg %p2247_p5 }
 0x9e8   : > { %p2253_p11 = pnand %p2252_p10, %p2248_p6 }
 0x9ea   : > { %2256 = shalt.err (!%p2253_p11)
}
 0x9eb   : > { %2046 = dma.vmem_to_hbm [thread:$0]  (%p2566_p9), %s1657_s26, 128, %s1659_s9, %s1642_s16  }
 0x9ec PF: > { %p2052_p12 = scmp.ge.s32.totalorder %s2371_s17, 2  ;;  %s1670_s4 = sand.u32 1, %s2327_s21  }
 0x9ed   : > { %s1671_s19 = scalar_lea.sflag [#allocation9], %s1670_s4 }
 0x9ee   : > { %p2049_p0 = pnand %p2052_p12, %p2575_p13 }
 0x9f0   : > { %p2050_p1 = pneg %p2049_p0 }
 0x9f2   : > { %2322 = dma.done.wait (%p2050_p1), %s1671_s19, 128  }
 0x9f3   : > { %2324 = vsyncadd (%p2050_p1), %s1671_s19, 4294967168  ;;  %s29_s17 = sadd.s32 1, %s2371_s17   ;;  %s2920_s18 = sld [smem:[#allocation11_spill]] }
 0x9f4   : > { %p26_p2 = scmp.ge.s32.totalorder %s29_s17, 10   ;;  %s2921_s23 = sld [smem:[#allocation21_spill]] }
 0x9f5   : > { %s2922_s24 = sld [smem:[#allocation12_spill]]  ;;  %s2930_s21 = smov %s2331_s22 }
 0x9f6   : > { %s2923_s25 = sld [smem:[#allocation18_spill]] }
 0x9f7   : > { %s2924_s26 = sld [smem:[#allocation13_spill]] }
 0x9f8   : > { %s2925_s27 = sld [smem:[#allocation14_spill]]  ;;  %28 = sbr.rel (!%p26_p2) target bundleno = 19 (0x13), region = 274 }
 0x9f9   : > { %s2926_s28 = sld [smem:[#allocation15_spill]]  ;;  %s2931_s22 = smov %s2920_s18 }
 0x9fa   : > { %s2927_s29 = sld [smem:[#allocation16_spill]] }
 0x9fb   : > { %s2928_s30 = sld [smem:[#allocation17_spill]] }
 0x9fc   : > { %s2929_s0 = sld [smem:[#allocation19_spill]] }
 0x9fd   :  { %1677 = vsyncpa [#allocation9], 1 }
 0x9fe   :  { %1679 = vsyncpa [#allocation9 + $0x1], 1 }

</bundles_post_ra>
